<compile_context>
chip_gen: v6e
topology: v6e:2x2x1
jax: 0.10.0
libtpu: 0.0.40
codegen_flags: <defaults>
</compile_context>

<pallas_src>
import functools

import jax
import jax.numpy as jnp
from jax.experimental import pallas as pl
from jax.experimental.pallas import tpu as pltpu


_INT32_MAX = int(jnp.iinfo(jnp.int32).max)


def _round_up(x: int, m: int) -> int:
    return ((x + m - 1) // m) * m


def _knn_kernel(y_ref, x_ref, xsq_ref, idx_ref, best_ref, *, k: int,
                point_dim: int, idx_bits: int):
    """One (batch, query-tile, source-chunk) grid step of brute-force kNN.

    y_ref:    (1, TQ, Dp)  query coordinates (channel-last, D zero-padded to Dp)
    x_ref:    (1, Dp, TS)  source-chunk coordinates (channel-first, lane-dense)
    xsq_ref:  (1, 1, TS)   per-source ||x||^2 (+inf on padded columns)
    idx_ref:  (1, k, TQ)   int32 per-batch source indices (written on last chunk)
    best_ref: (TQ, 128)    VMEM scratch; first k lanes hold the running best
                           packed (distance | global-index) keys, rest INT32_MAX.
    """
    s = pl.program_id(2)

    # (Re)initialise the running top-k scratch at the first source chunk.
    @pl.when(s == 0)
    def _():
        best_ref[...] = jnp.full(best_ref.shape, _INT32_MAX, jnp.int32)

    yq = y_ref[0].astype(jnp.float32)      # (TQ, Dp)
    xs = x_ref[0].astype(jnp.float32)      # (Dp, TS)
    xsq = xsq_ref[0].astype(jnp.float32)   # (1, TS)
    tq = yq.shape[0]
    ts = xs.shape[1]

    # Squared distances via the MXU: ||y||^2 - 2 y.x + ||x||^2 (clamped >= 0 so
    # the non-negative f32 bit pattern orders correctly as int32).
    cross = jnp.dot(yq, xs, preferred_element_type=jnp.float32)    # (TQ, TS) MXU
    ysq = None
    for d in range(point_dim):                                      # tiny (TQ,1) passes
        c = yq[:, d:d + 1]
        sq = c * c
        ysq = sq if ysq is None else ysq + sq
    dist = jnp.maximum(xsq + (ysq - 2.0 * cross), 0.0)              # (TQ, TS)

    # Fused (distance, global source index) sortable int32 key: clear the low
    # idx_bits mantissa bits and splice in the global column index, so one
    # cross-lane min recovers both the value and its (smallest) index.
    col = jax.lax.broadcasted_iota(jnp.int32, (tq, ts), 1) + s * ts
    dbits = pltpu.bitcast(dist, jnp.int32)
    key = (dbits & jnp.int32(-(1 << idx_bits))) | col

    # Merge this chunk into the running best-k.  Candidate keys are globally
    # unique (index embedded), so the equality mask removes exactly the winner.
    cand = jnp.concatenate([best_ref[...], key], axis=-1)           # (TQ, 128+TS)
    for i in range(k):
        kmin = jnp.min(cand, axis=-1, keepdims=True)                # (TQ, 1)
        best_ref[:, i:i + 1] = kmin                                 # bound live range
        cand = jnp.where(cand == kmin, jnp.int32(_INT32_MAX), cand)

    # Finalize on the last chunk: strip distance bits, emit lane-dense (k, TQ).
    @pl.when(s == pl.num_programs(2) - 1)
    def _():
        idx_mask = jnp.int32((1 << idx_bits) - 1)
        sel = jnp.transpose(best_ref[...])[:k, :] & idx_mask        # (k, TQ)
        idx_ref[0] = sel


def knn_grouping(cloud0, cloud1, *, point_dim: int, k: int):
    """JAX/Pallas equivalent of KnnGrouping.forward.

    cloud0, cloud1: (B, C, N) float32, channel-first like the PyTorch module.
    Returns (pts0, pts1, group_pts0, group_pts1) with shapes
    (B*N, C), (B*N, C), (B*N, k, C), (B*N, k, C).
    """
    B, C, N = cloud0.shape
    assert 0 < point_dim <= C
    assert 0 < k <= N, "KnnGrouping requires k <= number of points per cloud"
    assert k <= 128, "this kernel keeps the running best-k in a 128-lane scratch"

    # _prepare_batch: (B, C, N) -> (B, N, C) -> (B*N, C); rows batch-contiguous.
    pts0 = jnp.transpose(cloud0, (0, 2, 1)).reshape(B * N, C)
    pts1 = jnp.transpose(cloud1, (0, 2, 1)).reshape(B * N, C)

    # Kernel inputs: queries channel-last, sources channel-first (lane-dense).
    d_pad = _round_up(point_dim, 8)                       # sublane-aligned contraction
    y = jnp.transpose(cloud0[:, :point_dim, :], (0, 2, 1))   # (B, N, D)
    x = cloud1[:, :point_dim, :]                              # (B, D, N)
    xsq = jnp.sum(jnp.square(x), axis=1, keepdims=True)       # (B, 1, N)

    # Query tiling: modest TQ (cap 256), lane-aligned; prefer 128 when that buys
    # >= 4 parallel grid steps (v7x megacore has something to shard).
    steps_at_256 = B * (-(-N // 256))
    tq = 256 if steps_at_256 >= 4 else 128
    tq = min(tq, max(128, _round_up(N, 128)))
    n_q_pad = _round_up(N, tq)

    # Source chunking ("arbitrary" reduction axis): bounded VMEM for any N.
    ts = min(2048, _round_up(N, 128))
    n_s_pad = _round_up(N, ts)
    num_chunks = n_s_pad // ts

    idx_bits = max(1, (n_s_pad - 1).bit_length())
    assert idx_bits <= 22, "too many source points for the packed distance/index key"

    y = jnp.pad(y, ((0, 0), (0, n_q_pad - N), (0, d_pad - point_dim)))
    x = jnp.pad(x, ((0, 0), (0, d_pad - point_dim), (0, n_s_pad - N)))
    xsq = jnp.pad(xsq, ((0, 0), (0, 0), (0, n_s_pad - N)),
                  constant_values=jnp.inf)   # padded source columns can never win

    kern = functools.partial(_knn_kernel, k=k, point_dim=point_dim,
                             idx_bits=idx_bits)

    nbr = pl.pallas_call(
        kern,
        out_shape=jax.ShapeDtypeStruct((B, k, n_q_pad), jnp.int32),
        grid_spec=pltpu.PrefetchScalarGridSpec(
            num_scalar_prefetch=0,
            grid=(B, n_q_pad // tq, num_chunks),
            in_specs=[
                pl.BlockSpec((1, tq, d_pad), lambda b, q, s: (b, q, 0)),
                pl.BlockSpec((1, d_pad, ts), lambda b, q, s: (b, 0, s)),
                pl.BlockSpec((1, 1, ts), lambda b, q, s: (b, 0, s)),
            ],
            out_specs=pl.BlockSpec((1, k, tq), lambda b, q, s: (b, 0, q)),
            scratch_shapes=[pltpu.VMEM((tq, 128), jnp.int32)],
        ),
        compiler_params=pltpu.CompilerParams(
            dimension_semantics=("parallel", "parallel", "arbitrary"),
            vmem_limit_bytes=32 * 1024 * 1024,
        ),
    )(y, x, xsq)

    # Per-batch indices -> flat rows of pts1 (base add hoisted out of the kernel).
    base = (jnp.arange(B, dtype=jnp.int32) * N)[:, None, None]
    nbr_idx = jnp.transpose(nbr + base, (0, 2, 1))[:, :N, :].reshape(B * N, k)

    # group_index[0] is the query row repeated k times; group_index[1] are the
    # kNN rows into pts1.  The gathers remain cheap XLA glue on the outputs
    # (fusing the pts1 gather into the kernel is an optional further win on v5e).
    group_pts0 = jnp.repeat(pts0[:, None, :], k, axis=1)    # (B*N, k, C)
    group_pts1 = pts1[nbr_idx]                                # (B*N, k, C)

    return pts0, pts1, group_pts0, group_pts1


if __name__ == "__main__":
    B, C, N = 2, 4, 16
    point_dim, k = 3, 4

    key = jax.random.PRNGKey(0)
    k0, k1 = jax.random.split(key)
    cloud0 = jax.random.normal(k0, (B, C, N), dtype=jnp.float32)
    cloud1 = jax.random.normal(k1, (B, C, N), dtype=jnp.float32)

    fn = jax.jit(functools.partial(knn_grouping, point_dim=point_dim, k=k))
    pts0, pts1, group_pts0, group_pts1 = fn(cloud0, cloud1)
    jax.block_until_ready((pts0, pts1, group_pts0, group_pts1))

    # --- pure-JAX reference check ---
    p0 = jnp.transpose(cloud0, (0, 2, 1)).reshape(B * N, C)
    p1 = jnp.transpose(cloud1, (0, 2, 1)).reshape(B * N, C)
    batch = jnp.repeat(jnp.arange(B), N)
    dref = jnp.sum((p0[:, None, :point_dim] - p1[None, :, :point_dim]) ** 2, -1)
    dref = jnp.where(batch[:, None] == batch[None, :], dref, jnp.inf)
    ref_idx = jnp.argsort(dref, axis=-1)[:, :k]
    ref_gp1 = p1[ref_idx]

    # Compare via neighbor distances (robust to fp-identical ties).
    kd = jnp.sort(jnp.sum((group_pts1[..., :point_dim]
                           - p0[:, None, :point_dim]) ** 2, -1), axis=-1)
    rd = jnp.sort(jnp.sum((ref_gp1[..., :point_dim]
                           - p0[:, None, :point_dim]) ** 2, -1), axis=-1)
    assert pts0.shape == (B * N, C) and pts1.shape == (B * N, C)
    assert group_pts0.shape == (B * N, k, C) and group_pts1.shape == (B * N, k, C)
    assert jnp.allclose(pts0, p0) and jnp.allclose(pts1, p1)
    assert jnp.allclose(group_pts0, jnp.repeat(p0[:, None, :], k, axis=1))
    assert jnp.allclose(kd, rd, atol=1e-4), "kNN neighbor distances mismatch"

    print("KERNEL_OK")
</pallas_src>

<mosaic_0001>
module attributes {stable_mosaic.version = 11 : i64} {
  func.func @_knn_kernel(%arg0: i32, %arg1: i32, %arg2: i32, %arg3: memref<1x128x8xf32, #tpu.memory_space<vmem>>, %arg4: memref<1x8x128xf32, #tpu.memory_space<vmem>>, %arg5: memref<1x1x128xf32, #tpu.memory_space<vmem>>, %arg6: memref<1x4x128xi32, #tpu.memory_space<vmem>>, %arg7: memref<128x128xi32, #tpu.memory_space<vmem>>) attributes {dimension_semantics = [#tpu.dimension_semantics<parallel>, #tpu.dimension_semantics<parallel>, #tpu.dimension_semantics<arbitrary>], iteration_bounds = array<i64: 2, 1, 1>, scalar_prefetch = 0 : i64, scratch_operands = 1 : i64, tpu.core_type = #tpu.core_type<tc>, window_params = [{transform_indices = @transform_0, window_bounds = array<i64: 1, 128, 8>}, {transform_indices = @transform_1, window_bounds = array<i64: 1, 8, 128>}, {transform_indices = @transform_2, window_bounds = array<i64: 1, 1, 128>}, {transform_indices = @transform_3, window_bounds = array<i64: 1, 4, 128>}]} {
    %c0_i32 = arith.constant 0 : i32
    %0 = arith.cmpi eq, %arg2, %c0_i32 : i32
    %1 = arith.extui %0 : i1 to i32
    %c0_i32_0 = arith.constant 0 : i32
    %2 = arith.cmpi ne, %1, %c0_i32_0 : i32
    scf.if %2 {
      %c2147483647_i32_26 = arith.constant 2147483647 : i32
      %63 = vector.broadcast %c2147483647_i32_26 : i32 to vector<128x128xi32>
      %c0_27 = arith.constant 0 : index
      %c0_28 = arith.constant 0 : index
      %64 = vector.load %arg7[%c0_27, %c0_28] : memref<128x128xi32, #tpu.memory_space<vmem>>, vector<128x128xi32>
      tpu.vector_store %arg7[%c0_27, %c0_28], %63 {strides = array<i32>} : memref<128x128xi32, #tpu.memory_space<vmem>>, vector<128x128xi32>,
    } else {
    }
    %c0 = arith.constant 0 : index
    %c0_1 = arith.constant 0 : index
    %c0_2 = arith.constant 0 : index
    %3 = vector.load %arg3[%c0, %c0_1, %c0_2] : memref<1x128x8xf32, #tpu.memory_space<vmem>>, vector<1x128x8xf32>
    %4 = vector.shape_cast %3 : vector<1x128x8xf32> to vector<128x8xf32>
    %c0_3 = arith.constant 0 : index
    %c0_4 = arith.constant 0 : index
    %c0_5 = arith.constant 0 : index
    %5 = vector.load %arg4[%c0_3, %c0_4, %c0_5] : memref<1x8x128xf32, #tpu.memory_space<vmem>>, vector<1x8x128xf32>
    %6 = vector.shape_cast %5 : vector<1x8x128xf32> to vector<8x128xf32>
    %c0_6 = arith.constant 0 : index
    %c0_7 = arith.constant 0 : index
    %c0_8 = arith.constant 0 : index
    %7 = vector.load %arg5[%c0_6, %c0_7, %c0_8] : memref<1x1x128xf32, #tpu.memory_space<vmem>>, vector<1x1x128xf32>
    %8 = vector.shape_cast %7 : vector<1x1x128xf32> to vector<1x128xf32>
    %cst = arith.constant dense<0.000000e+00> : vector<128x128xf32>
    %9 = tpu.matmul %4, %6, %cst {dimension_numbers = #tpu.dot_dimension_numbers<[1], [0], [0], [1], [0, 0, 1, 1], [], []>} : vector<128x8xf32>, vector<8x128xf32>, vector<128x128xf32> -> vector<128x128xf32>
    %10 = vector.extract_strided_slice %4 {offsets = [0, 0], sizes = [128, 1], strides = [1, 1]} : vector<128x8xf32> to vector<128x1xf32>
    %11 = arith.mulf %10, %10 : vector<128x1xf32>
    %12 = vector.extract_strided_slice %4 {offsets = [0, 1], sizes = [128, 1], strides = [1, 1]} : vector<128x8xf32> to vector<128x1xf32>
    %13 = arith.mulf %12, %12 : vector<128x1xf32>
    %14 = arith.addf %11, %13 : vector<128x1xf32>
    %15 = vector.extract_strided_slice %4 {offsets = [0, 2], sizes = [128, 1], strides = [1, 1]} : vector<128x8xf32> to vector<128x1xf32>
    %16 = arith.mulf %15, %15 : vector<128x1xf32>
    %17 = arith.addf %14, %16 : vector<128x1xf32>
    %cst_9 = arith.constant 2.000000e+00 : f32
    %18 = vector.broadcast %cst_9 : f32 to vector<128x128xf32>
    %19 = arith.mulf %18, %9 : vector<128x128xf32>
    %20 = vector.broadcast %17 : vector<128x1xf32> to vector<128x128xf32>
    %21 = arith.subf %20, %19 : vector<128x128xf32>
    %22 = vector.broadcast %8 : vector<1x128xf32> to vector<128x128xf32>
    %23 = arith.addf %22, %21 : vector<128x128xf32>
    %cst_10 = arith.constant 0.000000e+00 : f32
    %24 = vector.broadcast %cst_10 : f32 to vector<128x128xf32>
    %25 = arith.maximumf %23, %24 : vector<128x128xf32>
    %26 = tpu.iota {dimensions = array<i32: 1>} : vector<128x128xi32>
    %c128_i32 = arith.constant 128 : i32
    %27 = arith.muli %arg2, %c128_i32 : i32
    %28 = vector.broadcast %27 : i32 to vector<128x128xi32>
    %29 = arith.addi %26, %28 : vector<128x128xi32>
    %30 = tpu.bitcast %25 : vector<128x128xf32> -> vector<128x128xi32>
    %c-128_i32 = arith.constant -128 : i32
    %31 = vector.broadcast %c-128_i32 : i32 to vector<128x128xi32>
    %32 = arith.andi %30, %31 : vector<128x128xi32>
    %33 = arith.ori %32, %29 : vector<128x128xi32>
    %c0_11 = arith.constant 0 : index
    %c0_12 = arith.constant 0 : index
    %34 = vector.load %arg7[%c0_11, %c0_12] : memref<128x128xi32, #tpu.memory_space<vmem>>, vector<128x128xi32>
    %35 = tpu.concatenate %34, %33 in 1 : vector<128x128xi32>, vector<128x128xi32> -> vector<128x256xi32>
    %cst_13 = arith.constant dense<2147483647> : vector<128xi32>
    %36 = vector.multi_reduction <minsi>, %35, %cst_13 [1] : vector<128x256xi32> to vector<128xi32>
    %37 = vector.shape_cast %36 : vector<128xi32> to vector<128x1xi32>
    %c0_14 = arith.constant 0 : index
    %c0_15 = arith.constant 0 : index
    %38 = vector.load %arg7[%c0_14, %c0_15] : memref<128x128xi32, #tpu.memory_space<vmem>>, vector<128x1xi32>
    tpu.vector_store %arg7[%c0_14, %c0_15], %37 {strides = array<i32>} : memref<128x128xi32, #tpu.memory_space<vmem>>, vector<128x1xi32>,
    %39 = vector.broadcast %37 : vector<128x1xi32> to vector<128x256xi32>
    %40 = arith.cmpi eq, %35, %39 : vector<128x256xi32>
    %c2147483647_i32 = arith.constant 2147483647 : i32
    %41 = vector.broadcast %c2147483647_i32 : i32 to vector<128x256xi32>
    %42 = arith.select %40, %41, %35 : vector<128x256xi1>, vector<128x256xi32>
    %cst_16 = arith.constant dense<2147483647> : vector<128xi32>
    %43 = vector.multi_reduction <minsi>, %42, %cst_16 [1] : vector<128x256xi32> to vector<128xi32>
    %44 = vector.shape_cast %43 : vector<128xi32> to vector<128x1xi32>
    %c0_17 = arith.constant 0 : index
    %c1 = arith.constant 1 : index
    %45 = vector.load %arg7[%c0_17, %c1] : memref<128x128xi32, #tpu.memory_space<vmem>>, vector<128x1xi32>
    tpu.vector_store %arg7[%c0_17, %c1], %44 {strides = array<i32>} : memref<128x128xi32, #tpu.memory_space<vmem>>, vector<128x1xi32>,
    %46 = vector.broadcast %44 : vector<128x1xi32> to vector<128x256xi32>
    %47 = arith.cmpi eq, %42, %46 : vector<128x256xi32>
    %c2147483647_i32_18 = arith.constant 2147483647 : i32
    %48 = vector.broadcast %c2147483647_i32_18 : i32 to vector<128x256xi32>
    %49 = arith.select %47, %48, %42 : vector<128x256xi1>, vector<128x256xi32>
    %cst_19 = arith.constant dense<2147483647> : vector<128xi32>
    %50 = vector.multi_reduction <minsi>, %49, %cst_19 [1] : vector<128x256xi32> to vector<128xi32>
    %51 = vector.shape_cast %50 : vector<128xi32> to vector<128x1xi32>
    %c0_20 = arith.constant 0 : index
    %c2 = arith.constant 2 : index
    %52 = vector.load %arg7[%c0_20, %c2] : memref<128x128xi32, #tpu.memory_space<vmem>>, vector<128x1xi32>
    tpu.vector_store %arg7[%c0_20, %c2], %51 {strides = array<i32>} : memref<128x128xi32, #tpu.memory_space<vmem>>, vector<128x1xi32>,
    %53 = vector.broadcast %51 : vector<128x1xi32> to vector<128x256xi32>
    %54 = arith.cmpi eq, %49, %53 : vector<128x256xi32>
    %c2147483647_i32_21 = arith.constant 2147483647 : i32
    %55 = vector.broadcast %c2147483647_i32_21 : i32 to vector<128x256xi32>
    %56 = arith.select %54, %55, %49 : vector<128x256xi1>, vector<128x256xi32>
    %cst_22 = arith.constant dense<2147483647> : vector<128xi32>
    %57 = vector.multi_reduction <minsi>, %56, %cst_22 [1] : vector<128x256xi32> to vector<128xi32>
    %58 = vector.shape_cast %57 : vector<128xi32> to vector<128x1xi32>
    %c0_23 = arith.constant 0 : index
    %c3 = arith.constant 3 : index
    %59 = vector.load %arg7[%c0_23, %c3] : memref<128x128xi32, #tpu.memory_space<vmem>>, vector<128x1xi32>
    tpu.vector_store %arg7[%c0_23, %c3], %58 {strides = array<i32>} : memref<128x128xi32, #tpu.memory_space<vmem>>, vector<128x1xi32>,
    %c0_i32_24 = arith.constant 0 : i32
    %60 = arith.cmpi eq, %arg2, %c0_i32_24 : i32
    %61 = arith.extui %60 : i1 to i32
    %c0_i32_25 = arith.constant 0 : i32
    %62 = arith.cmpi ne, %61, %c0_i32_25 : i32
    scf.if %62 {
      %c0_26 = arith.constant 0 : index
      %c0_27 = arith.constant 0 : index
      %63 = vector.load %arg7[%c0_26, %c0_27] : memref<128x128xi32, #tpu.memory_space<vmem>>, vector<128x128xi32>
      %64 = tpu.transpose %63, [1, 0] : vector<128x128xi32> -> vector<128x128xi32>
      %65 = vector.extract_strided_slice %64 {offsets = [0, 0], sizes = [4, 128], strides = [1, 1]} : vector<128x128xi32> to vector<4x128xi32>
      %c127_i32 = arith.constant 127 : i32
      %66 = vector.broadcast %c127_i32 : i32 to vector<4x128xi32>
      %67 = arith.andi %65, %66 : vector<4x128xi32>
      %c0_28 = arith.constant 0 : index
      %c0_29 = arith.constant 0 : index
      %c0_30 = arith.constant 0 : index
      %68 = vector.load %arg6[%c0_28, %c0_29, %c0_30] : memref<1x4x128xi32, #tpu.memory_space<vmem>>, vector<1x4x128xi32>
      %69 = vector.shape_cast %68 : vector<1x4x128xi32> to vector<4x128xi32>
      %70 = vector.shape_cast %67 : vector<4x128xi32> to vector<1x4x128xi32>
      tpu.vector_store %arg6[%c0_28, %c0_29, %c0_30], %70 {strides = array<i32>} : memref<1x4x128xi32, #tpu.memory_space<vmem>>, vector<1x4x128xi32>,
    } else {
    }
    return
  }
  func.func @transform_0(%arg0: i32, %arg1: i32, %arg2: i32) -> (i32, i32, i32) {
    %c0_i32 = arith.constant 0 : i32
    %c0_i32_0 = arith.constant 0 : i32
    return %arg0, %arg1, %c0_i32 : i32, i32, i32
  }
  func.func @transform_1(%arg0: i32, %arg1: i32, %arg2: i32) -> (i32, i32, i32) {
    %c0_i32 = arith.constant 0 : i32
    %c0_i32_0 = arith.constant 0 : i32
    return %arg0, %c0_i32, %arg2 : i32, i32, i32
  }
  func.func @transform_2(%arg0: i32, %arg1: i32, %arg2: i32) -> (i32, i32, i32) {
    %c0_i32 = arith.constant 0 : i32
    %c0_i32_0 = arith.constant 0 : i32
    return %arg0, %c0_i32, %arg2 : i32, i32, i32
  }
  func.func @transform_3(%arg0: i32, %arg1: i32, %arg2: i32) -> (i32, i32, i32) {
    %c0_i32 = arith.constant 0 : i32
    %c0_i32_0 = arith.constant 0 : i32
    return %arg0, %c0_i32, %arg1 : i32, i32, i32
  }
}

</mosaic_0001>

<bundles_post_ra>
// kernel: knn_grouping.1
= control target key start
LH: loop header
LB: loop body
LE: loop exit
PB: predicated region body
PF: predicated region fallthrough
CT: control target
= control target key end

     0   :  { %s2538_s12 = smov 0   ;;  %s2540_s13 = smov 0   ;;  %s3998_s0 = inlined_call_operand.vmem [shape: f32[2,128,8], index: 0, kind: input, shape index: {}]   ;;  %s3999_s1 = inlined_call_operand.vmem [shape: f32[2,8,128], index: 1, kind: input, shape index: {}]   ;;  %s4000_s2 = inlined_call_operand.vmem [shape: f32[2,1,128], index: 2, kind: input, shape index: {}]   ;;  %s4001_s3 = inlined_call_operand.vmem [shape: s32[2,4,128], index: 3, kind: output, shape index: {}]  }
   0x1   :  { %s2542_s14 = smov 0  }
   0x2 LB: > { %s32_s15 = sadd.s32 1, %s2508_s13  ;;  %p2324_p0 = scmp.ge.s32.totalorder %s2512_s14, 1  ;;  %s2512_s14 = sphi %s2542_s14, %s13_s14   ;;  %s2508_s13 = sphi %s2540_s13, %s4015_s13   ;;  %s2504_s12 = sphi %s2538_s12, %s4014_s12  }
   0x3   : > { %p34_p1 = scmp.ge.s32.totalorder %s32_s15, 2  ;;  %p192_p2 = scmp.lt.s32.totalorder %s2512_s14, 3 }
   0x5   : > { %s4017_s15 = smov (%p34_p1, %s32_s15), 0  ;;  %p193_p3 = pnand %p2324_p0, %p192_p2 }
   0x7   : > { %196 = sbr.rel (%p193_p3) target bundleno = 1572 (0x624), region = 32 }
   0xc   : > { %p236_p4 = scmp.lt.s32.totalorder %s2504_s12, 1  ;;  %v2514_v0 = vmov 0   ;;  %vm303_vm0 = vcmask 64512   ;;  %s2515_s24 = smov 126   ;;  %v2517_v45 = vmov 2147483647  }
   0xd   : > { %2422 = vset.pattern.permute.xlu0 %v2514_v0  ;;  %2423 = vset.pattern.permute.xlu1 %v2514_v0  ;;  %s2516_s25 = smov 127   ;;  %269 = vst [vmem:[#allocation2] sm:$0xff] %v2517_v45  ;;  %270 = vst [vmem:[#allocation2 + $0x8] sm:$0xff] %v2517_v45 }
   0xe   : > { %s4019_s12 = smov (!%p236_p4, %s2504_s12), 1  ;;  %271 = vst [vmem:[#allocation2 + $0x10] sm:$0xff] %v2517_v45  ;;  %272 = vst [vmem:[#allocation2 + $0x18] sm:$0xff] %v2517_v45 }
   0xf   : > { %s2348_s16 = sshll.u32 %s4019_s12, 7  ;;  %s2327_s17 = sshll.u32 %s4019_s12, 3  ;;  %273 = vst [vmem:[#allocation2 + $0x20] sm:$0xff] %v2517_v45  ;;  %274 = vst [vmem:[#allocation2 + $0x28] sm:$0xff] %v2517_v45 }
  0x10   : > { %s2563_s20 = scalar_lea.vmem %s3998_s0, %s2348_s16  ;;  %s251_s23 = scalar_lea.vmem %s3999_s1, %s2327_s17  ;;  %275 = vst [vmem:[#allocation2 + $0x30] sm:$0xff] %v2517_v45  ;;  %276 = vst [vmem:[#allocation2 + $0x38] sm:$0xff] %v2517_v45 }
  0x11   : > { %v285_v1 = vld [vmem:[%s2563_s20] sm:$0xff]  ;;  %v287_v2 = vld [vmem:[%s2563_s20 + $0x10] sm:$0xff]  ;;  %v286_v3 = vld [vmem:[%s2563_s20 + $0x8] sm:$0xff]  ;;  %277 = vst [vmem:[#allocation2 + $0x40] sm:$0xff] %v2517_v45  ;;  %s257_s28 = scalar_lea.vmem %s4000_s2, %s4019_s12  ;;  %s2328_s29 = sshll.u32 %s4019_s12, 2 }
  0x12   : > { %v2568_v4 = vmul.f32 %v285_v1, %v285_v1  ;;  %2368 = vmatprep.mubr.msk.f32.mxu0 %vm303_vm0, %v285_v1  ;;  %v2578_v5 = vmul.f32 %v287_v2, %v287_v2  ;;  %v2580_v6 = vmul.f32 %v286_v3, %v286_v3  ;;  %v293_v7 = vld [vmem:[%s2563_s20 + $0x40] sm:$0xff]  ;;  %v288_v8 = vld [vmem:[%s2563_s20 + $0x18] sm:$0xff]  ;;  %v294_v11 = vld [vmem:[%s2563_s20 + $0x48] sm:$0xff]  ;;  %278 = vst [vmem:[#allocation2 + $0x48] sm:$0xff] %v2517_v45  ;;  %s264_s5 = scalar_lea.vmem %s4001_s3, %s2328_s29 }
  0x13   : > { %v301_v9 = vld [vmem:[%s251_s23] sm:$0xff]  ;;  %2380 = vmatprep.mubr.msk.f32.mxu1 %vm303_vm0, %v293_v7  ;;  %v2589_v10 = vmul.f32 %v288_v8, %v288_v8  ;;  %v295_v13 = vld [vmem:[%s2563_s20 + $0x50] sm:$0xff]  ;;  %v296_v15 = vld [vmem:[%s2563_s20 + $0x58] sm:$0xff]  ;;  %v2644_v26 = vmul.f32 %v293_v7, %v293_v7  ;;  %v2650_v27 = vmul.f32 %v294_v11, %v294_v11  ;;  %279 = vst [vmem:[#allocation2 + $0x50] sm:$0xff] %v2517_v45 }
  0x14   : > { %593 = vrot.lane.b32.xlu1 %v2568_v4, %s2515_s24  ;;  %529 = vrot.lane.b32.xlu0 %v2568_v4, %s2516_s25  ;;  %v289_v12 = vld [vmem:[%s2563_s20 + $0x20] sm:$0xff]  ;;  %v290_v16 = vld [vmem:[%s2563_s20 + $0x28] sm:$0xff]  ;;  %v2656_v28 = vmul.f32 %v295_v13, %v295_v13  ;;  %v2662_v29 = vmul.f32 %v296_v15, %v296_v15  ;;  %280 = vst [vmem:[#allocation2 + $0x58] sm:$0xff] %v2517_v45  ;;  %281 = vst [vmem:[#allocation2 + $0x60] sm:$0xff] %v2517_v45 }
  0x15   : > { %2366 = vmatprep.subr.mxu0 %v301_v9  ;;  %2392 = vmatprep.subr.mxu1 %v301_v9  ;;  %v2602_v14 = vmul.f32 %v289_v12, %v289_v12  ;;  %v297_v17 = vld [vmem:[%s2563_s20 + $0x60] sm:$0xff]  ;;  %v2615_v18 = vmul.f32 %v290_v16, %v290_v16  ;;  %v298_v19 = vld [vmem:[%s2563_s20 + $0x68] sm:$0xff]  ;;  %v291_v20 = vld [vmem:[%s2563_s20 + $0x30] sm:$0xff]  ;;  %282 = vst [vmem:[#allocation2 + $0x68] sm:$0xff] %v2517_v45 }
  0x16   : > { %2367 = vmatpush3.msra.mxu0 %v301_v9  ;;  %2393 = vmatpush3.msra.mxu1 %v301_v9  ;;  %v299_v21 = vld [vmem:[%s2563_s20 + $0x70] sm:$0xff]  ;;  %v2628_v22 = vmul.f32 %v291_v20, %v291_v20  ;;  %v292_v23 = vld [vmem:[%s2563_s20 + $0x38] sm:$0xff]  ;;  %v2668_v30 = vmul.f32 %v297_v17, %v297_v17  ;;  %v2674_v31 = vmul.f32 %v298_v19, %v298_v19 }
  0x17   : > { %2369 = vmatmul.mubr.msk.f32.vlgmr.msra.gmra.mxu0 %vm303_vm0, %v286_v3  ;;  %2381 = vmatmul.mubr.msk.f32.vlgmr.msra.gmra.mxu1 %vm303_vm0, %v294_v11  ;;  %v300_v24 = vld [vmem:[%s2563_s20 + $0x78] sm:$0xff]  ;;  %v2638_v25 = vmul.f32 %v292_v23, %v292_v23  ;;  %v2680_v32 = vmul.f32 %v299_v21, %v299_v21  ;;  %283 = vst [vmem:[#allocation2 + $0x70] sm:$0xff] %v2517_v45  ;;  %284 = vst [vmem:[#allocation2 + $0x78] sm:$0xff] %v2517_v45 }
  0x18   : > { %533 = vrot.lane.b32.xlu1 %v2578_v5, %s2516_s25  ;;  %531 = vrot.lane.b32.xlu0 %v2580_v6, %s2516_s25  ;;  %v2686_v33 = vmul.f32 %v300_v24, %v300_v24 }
  0x19   : > { %2371 = vmatprep.mubr.msk.f32.mxu0 %vm303_vm0, %v287_v2  ;;  %2383 = vmatprep.mubr.msk.f32.mxu1 %vm303_vm0, %v295_v13 }
  0x1b   : > { %2372 = vmatmul.mubr.msk.f32.gmra.mxu0 %vm303_vm0, %v288_v8  ;;  %2384 = vmatmul.mubr.msk.f32.gmra.mxu1 %vm303_vm0, %v296_v15 }
  0x1c   : > { %535 = vrot.lane.b32.xlu1 %v2589_v10, %s2516_s25  ;;  %595 = vrot.lane.b32.xlu0 %v2580_v6, %s2515_s24 }
  0x1d   : > { %2374 = vmatprep.mubr.msk.f32.mxu0 %vm303_vm0, %v289_v12  ;;  %2386 = vmatprep.mubr.msk.f32.mxu1 %vm303_vm0, %v297_v17 }
  0x1f   : > { %2375 = vmatmul.mubr.msk.f32.gmra.mxu0 %vm303_vm0, %v290_v16  ;;  %2387 = vmatmul.mubr.msk.f32.gmra.mxu1 %vm303_vm0, %v298_v19 }
  0x20   : > { %537 = vrot.lane.b32.xlu1 %v2602_v14, %s2516_s25  ;;  %597 = vrot.lane.b32.xlu0 %v2578_v5, %s2515_s24 }
  0x21   : > { %2377 = vmatprep.mubr.msk.f32.mxu0 %vm303_vm0, %v291_v20  ;;  %2389 = vmatprep.mubr.msk.f32.mxu1 %vm303_vm0, %v299_v21 }
  0x23   : > { %2378 = vmatmul.mubr.msk.f32.gmra.mxu0 %vm303_vm0, %v292_v23  ;;  %2390 = vmatmul.mubr.msk.f32.gmra.mxu1 %vm303_vm0, %v300_v24 }
  0x24   : > { %539 = vrot.lane.b32.xlu1 %v2615_v18, %s2516_s25  ;;  %599 = vrot.lane.b32.xlu0 %v2589_v10, %s2515_s24 }
  0x28   : > { %541 = vrot.lane.b32.xlu1 %v2628_v22, %s2516_s25  ;;  %601 = vrot.lane.b32.xlu0 %v2602_v14, %s2515_s24 }
  0x2c   : > { %543 = vrot.lane.b32.xlu1 %v2638_v25, %s2516_s25  ;;  %603 = vrot.lane.b32.xlu0 %v2615_v18, %s2515_s24 }
  0x30   : > { %545 = vrot.lane.b32.xlu1 %v2644_v26, %s2516_s25  ;;  %605 = vrot.lane.b32.xlu0 %v2628_v22, %s2515_s24 }
  0x34   : > { %547 = vrot.lane.b32.xlu1 %v2650_v27, %s2516_s25  ;;  %607 = vrot.lane.b32.xlu0 %v2638_v25, %s2515_s24 }
  0x38   : > { %549 = vrot.lane.b32.xlu1 %v2656_v28, %s2516_s25  ;;  %609 = vrot.lane.b32.xlu0 %v2644_v26, %s2515_s24 }
  0x3c   : > { %551 = vrot.lane.b32.xlu1 %v2662_v29, %s2516_s25  ;;  %611 = vrot.lane.b32.xlu0 %v2650_v27, %s2515_s24 }
  0x40   : > { %553 = vrot.lane.b32.xlu1 %v2668_v30, %s2516_s25  ;;  %613 = vrot.lane.b32.xlu0 %v2656_v28, %s2515_s24 }
  0x44   : > { %555 = vrot.lane.b32.xlu1 %v2674_v31, %s2516_s25  ;;  %615 = vrot.lane.b32.xlu0 %v2662_v29, %s2515_s24 }
  0x48   : > { %557 = vrot.lane.b32.xlu1 %v2680_v32, %s2516_s25  ;;  %617 = vrot.lane.b32.xlu0 %v2668_v30, %s2515_s24 }
  0x4c   : > { %559 = vrot.lane.b32.xlu1 %v2686_v33, %s2516_s25  ;;  %619 = vrot.lane.b32.xlu0 %v2674_v31, %s2515_s24 }
  0x50   : > { %623 = vrot.lane.b32.xlu1 %v2686_v33, %s2515_s24  ;;  %621 = vrot.lane.b32.xlu0 %v2680_v32, %s2515_s24 }
  0x86   : > { %v594_v34 = vpop.permute.xlu1 %593  ;;  %v530_v35 = vpop.permute.xlu0 %529 }
  0x87   : > { %v577_v36 = vadd.f32 %v530_v35, %v2568_v4 }
  0x89   : > { %v641_v37 = vadd.f32 %v594_v34, %v577_v36 }
  0x8a   : > { %v534_v38 = vpop.permute.xlu1 %533  ;;  %v532_v39 = vpop.permute.xlu0 %531 }
  0x8b   : > { %675 = vperm.xlu0 %2422, %v641_v37   ;;  %v578_v40 = vadd.f32 %v532_v39, %v2580_v6  ;;  %v579_v44 = vadd.f32 %v534_v38, %v2578_v5 }
  0x8e   : > { %v536_v41 = vpop.permute.xlu1 %535  ;;  %v596_v42 = vpop.permute.xlu0 %595 }
  0x8f   : > { %v642_v43 = vadd.f32 %v596_v42, %v578_v40  ;;  %v580_v49 = vadd.f32 %v536_v41, %v2589_v10  ;;  %v807_v41 = vlaneseq }
  0x91   : > { %680 = vperm.xlu1 %2423, %v642_v43   ;;  %v2719_v45 = vand.u32 127, %v807_v41 }
  0x92   : > { %v538_v46 = vpop.permute.xlu1 %537  ;;  %v598_v47 = vpop.permute.xlu0 %597 }
  0x93   : > { %v643_v48 = vadd.f32 %v598_v47, %v579_v44  ;;  %v581_v53 = vadd.f32 %v538_v46, %v2602_v14 }
  0x95   : > { %685 = vperm.xlu1 %2423, %v643_v48  }
  0x96   : > { %v540_v50 = vpop.permute.xlu1 %539  ;;  %v600_v51 = vpop.permute.xlu0 %599 }
  0x97   : > { %v644_v52 = vadd.f32 %v600_v51, %v580_v49  ;;  %v582_v57 = vadd.f32 %v540_v50, %v2615_v18 }
  0x99   : > { %690 = vperm.xlu0 %2422, %v644_v52  }
  0x9a   : > { %v542_v54 = vpop.permute.xlu1 %541  ;;  %v602_v55 = vpop.permute.xlu0 %601 }
  0x9b   : > { %v645_v56 = vadd.f32 %v602_v55, %v581_v53  ;;  %v583_v61 = vadd.f32 %v542_v54, %v2628_v22 }
  0x9d   : > { %695 = vperm.xlu1 %2423, %v645_v56  }
  0x9e   : > { %v544_v58 = vpop.permute.xlu1 %543  ;;  %v604_v59 = vpop.permute.xlu0 %603 }
  0x9f   : > { %v646_v60 = vadd.f32 %v604_v59, %v582_v57  ;;  %v584_v1 = vadd.f32 %v544_v58, %v2638_v25 }
  0xa1   : > { %700 = vperm.xlu0 %2422, %v646_v60  }
  0xa2   : > { %v546_v62 = vpop.permute.xlu1 %545  ;;  %v606_v63 = vpop.permute.xlu0 %605 }
  0xa3   : > { %v647_v0 = vadd.f32 %v606_v63, %v583_v61  ;;  %v585_v5 = vadd.f32 %v546_v62, %v2644_v26 }
  0xa5   : > { %705 = vperm.xlu1 %2423, %v647_v0  }
  0xa6   : > { %v548_v2 = vpop.permute.xlu1 %547  ;;  %v608_v3 = vpop.permute.xlu0 %607 }
  0xa7   : > { %v648_v4 = vadd.f32 %v608_v3, %v584_v1  ;;  %v586_v9 = vadd.f32 %v548_v2, %v2650_v27 }
  0xa9   : > { %710 = vperm.xlu0 %2422, %v648_v4  }
  0xaa   : > { %v550_v6 = vpop.permute.xlu1 %549  ;;  %v610_v7 = vpop.permute.xlu0 %609 }
  0xab   : > { %v649_v8 = vadd.f32 %v610_v7, %v585_v5  ;;  %v587_v13 = vadd.f32 %v550_v6, %v2656_v28 }
  0xad   : > { %715 = vperm.xlu1 %2423, %v649_v8  }
  0xae   : > { %v552_v10 = vpop.permute.xlu1 %551  ;;  %v612_v11 = vpop.permute.xlu0 %611 }
  0xaf   : > { %v650_v12 = vadd.f32 %v612_v11, %v586_v9  ;;  %v588_v17 = vadd.f32 %v552_v10, %v2662_v29 }
  0xb1   : > { %720 = vperm.xlu0 %2422, %v650_v12  }
  0xb2   : > { %v554_v14 = vpop.permute.xlu1 %553  ;;  %v614_v15 = vpop.permute.xlu0 %613 }
  0xb3   : > { %v651_v16 = vadd.f32 %v614_v15, %v587_v13  ;;  %v589_v21 = vadd.f32 %v554_v14, %v2668_v30 }
  0xb5   : > { %725 = vperm.xlu1 %2423, %v651_v16  }
  0xb6   : > { %v556_v18 = vpop.permute.xlu1 %555  ;;  %v616_v19 = vpop.permute.xlu0 %615 }
  0xb7   : > { %v652_v20 = vadd.f32 %v616_v19, %v588_v17  ;;  %v590_v25 = vadd.f32 %v556_v18, %v2674_v31  ;;  %v2716_v31 = vld [vmem:[%s257_s28] ss:$0 sm:$0xff] }
  0xb9   : > { %730 = vperm.xlu0 %2422, %v652_v20  }
  0xba   : > { %v558_v22 = vpop.permute.xlu1 %557  ;;  %v618_v23 = vpop.permute.xlu0 %617 }
  0xbb   : > { %v653_v24 = vadd.f32 %v618_v23, %v589_v21  ;;  %v591_v29 = vadd.f32 %v558_v22, %v2680_v32 }
  0xbd   : > { %735 = vperm.xlu1 %2423, %v653_v24  }
  0xbe   : > { %v560_v26 = vpop.permute.xlu1 %559  ;;  %v620_v27 = vpop.permute.xlu0 %619 }
  0xbf   : > { %v592_v28 = vadd.f32 %v560_v26, %v2686_v33  ;;  %v654_v34 = vadd.f32 %v620_v27, %v590_v25 }
  0xc1   : > { %740 = vperm.xlu0 %2422, %v654_v34  }
  0xc2   : > { %v624_v35 = vpop.permute.xlu1 %623  ;;  %v622_v36 = vpop.permute.xlu0 %621 }
  0xc3   : > { %v656_v37 = vadd.f32 %v624_v35, %v592_v28  ;;  %v655_v30 = vadd.f32 %v622_v36, %v591_v29 }
  0xc5   : > { %750 = vperm.xlu0 %2422, %v656_v37   ;;  %745 = vperm.xlu1 %2423, %v655_v30  }
  0xd7   : > { %v2370_v38 = vpop.f32.mrf.mxu0  ;;  %v2382_v29 = vpop.f32.mrf.mxu1 }
  0xd8   : > { %v658_v44 = vmul.f32 2.0, %v2370_v38 }
  0xd9   : > { %v418_v39 = vpop.f32.mrf.mxu0 }
  0xda   : > { %v657_v40 = vmul.f32 2.0, %v418_v39 }
  0xdb   : > { %v2373_v32 = vpop.f32.mrf.mxu0 }
  0xdc   : > { %v660_v59 = vmul.f32 2.0, %v2373_v32 }
  0xdd   : > { %v428_v48 = vpop.f32.mrf.mxu0 }
  0xde   : > { %v659_v53 = vmul.f32 2.0, %v428_v48 }
  0xdf   : > { %v2376_v55 = vpop.f32.mrf.mxu0 }
  0xe0   : > { %v662_v15 = vmul.f32 2.0, %v2376_v55 }
  0xe1   : > { %v438_v0 = vpop.f32.mrf.mxu0 }
  0xe2   : > { %v661_v7 = vmul.f32 2.0, %v438_v0 }
  0xe3   : > { %v2379_v8 = vpop.f32.mrf.mxu0 }
  0xe5   : > { %v448_v18 = vpop.f32.mrf.mxu0 }
  0xe6   : > { %v663_v26 = vmul.f32 2.0, %v448_v18 }
 0x106   : > { %v676_v33 = vpop.permute.xlu0 %675 }
 0x107   : > { %v753_v42 = vsub.f32 %v676_v33, %v657_v40  ;;  %v664_v40 = vmul.f32 2.0, %v2379_v8 }
 0x109   : > { %v775_v43 = vadd.f32 %v2716_v31, %v753_v42  ;;  %v458_v42 = vpop.f32.mrf.mxu1 }
 0x10b   : > { %v791_v46 = vmax.f32 %v775_v43, 0.0  ;;  %v2385_v55 = vpop.f32.mrf.mxu1 }
 0x10c   : > { %v681_v47 = vpop.permute.xlu1 %680 }
 0x10d   : > { %v828_v49 = vand.u32 4294967168, %v791_v46  ;;  %v754_v50 = vsub.f32 %v681_v47, %v658_v44 }
 0x10f   : > { %v2722_v51 = vor.u32 %v828_v49, %v2719_v45  ;;  %v776_v52 = vadd.f32 %v2716_v31, %v754_v50  ;;  %v665_v50 = vmul.f32 2.0, %v458_v42 }
 0x110   : > { %v686_v54 = vpop.permute.xlu1 %685 }
 0x111   : > { %v792_v56 = vmax.f32 %v776_v52, 0.0  ;;  %v755_v57 = vsub.f32 %v686_v54, %v659_v53  ;;  %vm2425_vm1 = vcmp.gt.s32.totalorder %v2722_v51, 2147483647 }
 0x112   : > { %v2727_v58 = vsel %vm2425_vm1, 2147483647, %v2722_v51 }
 0x113   : > { %v829_v60 = vand.u32 4294967168, %v792_v56  ;;  %v777_v61 = vadd.f32 %v2716_v31, %v755_v57  ;;  %v879_v62 = vshra.s32 %v2727_v58, 16 }
 0x114   : > { %v691_v63 = vpop.permute.xlu0 %690 }
 0x115   : > { %v2732_v1 = vor.u32 %v829_v60, %v2719_v45  ;;  %v793_v2 = vmax.f32 %v777_v61, 0.0  ;;  %v756_v3 = vsub.f32 %v691_v63, %v660_v59  ;;  %v2734_v4 = vcvt.s32.f32 %v879_v62 }
 0x116   : > { %v666_v63 = vmul.f32 2.0, %v2382_v29 }
 0x117   : > { %v830_v5 = vand.u32 4294967168, %v793_v2  ;;  %v778_v6 = vadd.f32 %v2716_v31, %v756_v3  ;;  %882 = vmin.xlane.f32.xlu1 %v2734_v4  ;;  %vm2426_vm2 = vcmp.gt.s32.totalorder %v2732_v1, 2147483647  ;;  %v468_v3 = vpop.f32.mrf.mxu1 }
 0x118   : > { %v696_v9 = vpop.permute.xlu1 %695  ;;  %v2740_v10 = vsel %vm2426_vm2, 2147483647, %v2732_v1 }
 0x119   : > { %v2743_v11 = vor.u32 %v830_v5, %v2719_v45  ;;  %v794_v12 = vmax.f32 %v778_v6, 0.0  ;;  %v757_v13 = vsub.f32 %v696_v9, %v661_v7  ;;  %v895_v14 = vshra.s32 %v2740_v10, 16  ;;  %v2388_v18 = vpop.f32.mrf.mxu1 }
 0x11b   : > { %v831_v16 = vand.u32 4294967168, %v794_v12  ;;  %v779_v17 = vadd.f32 %v2716_v31, %v757_v13  ;;  %v2747_v19 = vcvt.s32.f32 %v895_v14  ;;  %vm2427_vm3 = vcmp.gt.s32.totalorder %v2743_v11, 2147483647 }
 0x11c   : > { %v701_v20 = vpop.permute.xlu0 %700  ;;  %v2751_v21 = vsel %vm2427_vm3, 2147483647, %v2743_v11  ;;  %v667_v14 = vmul.f32 2.0, %v468_v3 }
 0x11d   : > { %v2754_v22 = vor.u32 %v831_v16, %v2719_v45  ;;  %v795_v23 = vmax.f32 %v779_v17, 0.0  ;;  %v758_v24 = vsub.f32 %v701_v20, %v662_v15  ;;  %898 = vmin.xlane.f32.xlu0 %v2747_v19  ;;  %v911_v25 = vshra.s32 %v2751_v21, 16 }
 0x11f   : > { %v832_v27 = vand.u32 4294967168, %v795_v23  ;;  %v780_v28 = vadd.f32 %v2716_v31, %v758_v24  ;;  %v2759_v34 = vcvt.s32.f32 %v911_v25  ;;  %vm2428_vm4 = vcmp.gt.s32.totalorder %v2754_v22, 2147483647 }
 0x120   : > { %v706_v35 = vpop.permute.xlu1 %705  ;;  %v2763_v36 = vsel %vm2428_vm4, 2147483647, %v2754_v22 }
 0x121   : > { %v2766_v37 = vor.u32 %v832_v27, %v2719_v45  ;;  %v796_v30 = vmax.f32 %v780_v28, 0.0  ;;  %v759_v38 = vsub.f32 %v706_v35, %v663_v26  ;;  %914 = vmin.xlane.f32.xlu0 %v2759_v34  ;;  %v927_v39 = vshra.s32 %v2763_v36, 16 }
 0x122   : > { %v668_v28 = vmul.f32 2.0, %v2385_v55 }
 0x123   : > { %v833_v33 = vand.u32 4294967168, %v796_v30  ;;  %v781_v41 = vadd.f32 %v2716_v31, %v759_v38  ;;  %v2771_v32 = vcvt.s32.f32 %v927_v39  ;;  %vm2429_vm5 = vcmp.gt.s32.totalorder %v2766_v37, 2147483647  ;;  %v478_v30 = vpop.f32.mrf.mxu1 }
 0x124   : > { %v711_v43 = vpop.permute.xlu0 %710  ;;  %v2775_v44 = vsel %vm2429_vm5, 2147483647, %v2766_v37 }
 0x125   : > { %v2778_v46 = vor.u32 %v833_v33, %v2719_v45  ;;  %v797_v47 = vmax.f32 %v781_v41, 0.0  ;;  %v760_v48 = vsub.f32 %v711_v43, %v664_v40  ;;  %930 = vmin.xlane.f32.xlu1 %v2771_v32  ;;  %v943_v49 = vshra.s32 %v2775_v44, 16 }
 0x127   : > { %v834_v52 = vand.u32 4294967168, %v797_v47  ;;  %v782_v53 = vadd.f32 %v2716_v31, %v760_v48  ;;  %v2783_v54 = vcvt.s32.f32 %v943_v49  ;;  %vm2430_vm6 = vcmp.gt.s32.totalorder %v2778_v46, 2147483647 }
 0x128   : > { %v716_v56 = vpop.permute.xlu1 %715  ;;  %v2787_v57 = vsel %vm2430_vm6, 2147483647, %v2778_v46  ;;  %v669_v47 = vmul.f32 2.0, %v478_v30 }
 0x129   : > { %v2790_v59 = vor.u32 %v834_v52, %v2719_v45  ;;  %v798_v60 = vmax.f32 %v782_v53, 0.0  ;;  %v761_v61 = vsub.f32 %v716_v56, %v665_v50  ;;  %946 = vmin.xlane.f32.xlu0 %v2783_v54  ;;  %v959_v62 = vshra.s32 %v2787_v57, 16  ;;  %v2391_v52 = vpop.f32.mrf.mxu1 }
 0x12b   : > { %v835_v0 = vand.u32 4294967168, %v798_v60  ;;  %v783_v2 = vadd.f32 %v2716_v31, %v761_v61  ;;  %v2795_v5 = vcvt.s32.f32 %v959_v62  ;;  %vm2431_vm7 = vcmp.gt.s32.totalorder %v2790_v59, 2147483647  ;;  %v488_v3 = vpop.f32.mrf.mxu1 }
 0x12c   : > { %v721_v6 = vpop.permute.xlu0 %720  ;;  %v2799_v7 = vsel %vm2431_vm7, 2147483647, %v2790_v59 }
 0x12d   : > { %v2802_v8 = vor.u32 %v835_v0, %v2719_v45  ;;  %v799_v9 = vmax.f32 %v783_v2, 0.0  ;;  %v762_v12 = vsub.f32 %v721_v6, %v666_v63  ;;  %962 = vmin.xlane.f32.xlu1 %v2795_v5  ;;  %v975_v13 = vshra.s32 %v2799_v7, 16 }
 0x12e   : > { %v670_v63 = vmul.f32 2.0, %v2388_v18  ;;  %v672_v18 = vmul.f32 2.0, %v2391_v52 }
 0x12f   : > { %v836_v15 = vand.u32 4294967168, %v799_v9  ;;  %v784_v16 = vadd.f32 %v2716_v31, %v762_v12  ;;  %v2807_v17 = vcvt.s32.f32 %v975_v13  ;;  %vm2432_vm8 = vcmp.gt.s32.totalorder %v2802_v8, 2147483647 }
 0x130   : > { %v726_v20 = vpop.permute.xlu1 %725  ;;  %v2811_v23 = vsel %vm2432_vm8, 2147483647, %v2802_v8 }
 0x131   : > { %v2814_v24 = vor.u32 %v836_v15, %v2719_v45  ;;  %v800_v25 = vmax.f32 %v784_v16, 0.0  ;;  %v763_v26 = vsub.f32 %v726_v20, %v667_v14  ;;  %978 = vmin.xlane.f32.xlu0 %v2807_v17  ;;  %v991_v27 = vshra.s32 %v2811_v23, 16 }
 0x132   : > { %v671_v20 = vmul.f32 2.0, %v488_v3 }
 0x133   : > { %v837_v29 = vand.u32 4294967168, %v800_v25  ;;  %v785_v35 = vadd.f32 %v2716_v31, %v763_v26  ;;  %v2819_v38 = vcvt.s32.f32 %v991_v27  ;;  %vm2433_vm9 = vcmp.gt.s32.totalorder %v2814_v24, 2147483647 }
 0x134   : > { %v731_v39 = vpop.permute.xlu0 %730  ;;  %v2823_v40 = vsel %vm2433_vm9, 2147483647, %v2814_v24 }
 0x135   : > { %v2826_v33 = vor.u32 %v837_v29, %v2719_v45  ;;  %v801_v41 = vmax.f32 %v785_v35, 0.0  ;;  %v764_v42 = vsub.f32 %v731_v39, %v668_v28  ;;  %994 = vmin.xlane.f32.xlu1 %v2819_v38  ;;  %v1007_v43 = vshra.s32 %v2823_v40, 16 }
 0x137   : > { %v838_v48 = vand.u32 4294967168, %v801_v41  ;;  %v786_v49 = vadd.f32 %v2716_v31, %v764_v42  ;;  %v2831_v50 = vcvt.s32.f32 %v1007_v43  ;;  %vm2434_vm10 = vcmp.gt.s32.totalorder %v2826_v33, 2147483647 }
 0x138   : > { %v736_v53 = vpop.permute.xlu1 %735  ;;  %v2835_v55 = vsel %vm2434_vm10, 2147483647, %v2826_v33 }
 0x139   : > { %v2838_v56 = vor.u32 %v838_v48, %v2719_v45  ;;  %v802_v60 = vmax.f32 %v786_v49, 0.0  ;;  %v765_v61 = vsub.f32 %v736_v53, %v669_v47  ;;  %1010 = vmin.xlane.f32.xlu0 %v2831_v50  ;;  %v1023_v62 = vshra.s32 %v2835_v55, 16 }
 0x13b   : > { %v839_v0 = vand.u32 4294967168, %v802_v60  ;;  %v787_v2 = vadd.f32 %v2716_v31, %v765_v61  ;;  %v2843_v6 = vcvt.s32.f32 %v1023_v62  ;;  %vm2435_vm11 = vcmp.gt.s32.totalorder %v2838_v56, 2147483647 }
 0x13c   : > { %v741_v9 = vpop.permute.xlu0 %740  ;;  %v2847_v12 = vsel %vm2435_vm11, 2147483647, %v2838_v56 }
 0x13d   : > { %v2850_v13 = vor.u32 %v839_v0, %v2719_v45  ;;  %v803_v14 = vmax.f32 %v787_v2, 0.0  ;;  %v766_v15 = vsub.f32 %v741_v9, %v670_v63  ;;  %1026 = vmin.xlane.f32.xlu1 %v2843_v6  ;;  %v1039_v16 = vshra.s32 %v2847_v12, 16 }
 0x13f   : > { %v840_v25 = vand.u32 4294967168, %v803_v14  ;;  %v788_v26 = vadd.f32 %v2716_v31, %v766_v15  ;;  %v2855_v27 = vcvt.s32.f32 %v1039_v16  ;;  %vm2436_vm12 = vcmp.gt.s32.totalorder %v2850_v13, 2147483647 }
 0x140   : > { %v746_v28 = vpop.permute.xlu1 %745  ;;  %v751_v29 = vpop.permute.xlu0 %750  ;;  %v2859_v35 = vsel %vm2436_vm12, 2147483647, %v2850_v13 }
 0x141   : > { %v2862_v30 = vor.u32 %v840_v25, %v2719_v45  ;;  %v804_v39 = vmax.f32 %v788_v26, 0.0  ;;  %v767_v41 = vsub.f32 %v746_v28, %v671_v20  ;;  %v768_v42 = vsub.f32 %v751_v29, %v672_v18  ;;  %1042 = vmin.xlane.f32.xlu0 %v2855_v27 }
 0x142   : > { %v1055_v43 = vshra.s32 %v2859_v35, 16  ;;  %v878_v29 = vand.u32 65535, %v2727_v58 }
 0x143   : > { %v841_v47 = vand.u32 4294967168, %v804_v39  ;;  %v789_v48 = vadd.f32 %v2716_v31, %v767_v41  ;;  %v790_v49 = vadd.f32 %v2716_v31, %v768_v42  ;;  %vm2437_vm13 = vcmp.gt.s32.totalorder %v2862_v30, 2147483647 }
 0x144   : > { %v2869_v52 = vcvt.s32.f32 %v1055_v43  ;;  %v2872_v53 = vsel %vm2437_vm13, 2147483647, %v2862_v30  ;;  %v880_v41 = vcvt.s32.f32 %v878_v29  ;;  %v894_v43 = vand.u32 65535, %v2740_v10 }
 0x145   : > { %v2875_v60 = vor.u32 %v841_v47, %v2719_v45  ;;  %v805_v61 = vmax.f32 %v789_v48, 0.0  ;;  %v806_v62 = vmax.f32 %v790_v49, 0.0  ;;  %v1071_v63 = vshra.s32 %v2872_v53, 16 }
 0x146   : > { %1058 = vmin.xlane.f32.xlu1 %v2869_v52  ;;  %v896_v48 = vcvt.s32.f32 %v894_v43  ;;  %v910_v49 = vand.u32 65535, %v2751_v21  ;;  %v942_v21 = vand.u32 65535, %v2775_v44  ;;  %v974_v44 = vand.u32 65535, %v2799_v7 }
 0x147   : > { %v842_v0 = vand.u32 4294967168, %v805_v61  ;;  %v843_v2 = vand.u32 4294967168, %v806_v62  ;;  %v2879_v3 = vcvt.s32.f32 %v1071_v63  ;;  %vm2438_vm14 = vcmp.gt.s32.totalorder %v2875_v60, 2147483647 }
 0x148   : > { %v2883_v31 = vsel %vm2438_vm14, 2147483647, %v2875_v60  ;;  %v912_v62 = vcvt.s32.f32 %v910_v49  ;;  %v926_v63 = vand.u32 65535, %v2763_v36  ;;  %v958_v36 = vand.u32 65535, %v2787_v57 }
 0x149   : > { %v2886_v9 = vor.u32 %v842_v0, %v2719_v45  ;;  %v2889_v14 = vor.u32 %v843_v2, %v2719_v45  ;;  %1074 = vmin.xlane.f32.xlu0 %v2879_v3  ;;  %v1087_v15 = vshra.s32 %v2883_v31, 16  ;;  %v990_v57 = vand.u32 65535, %v2811_v23 }
 0x14a   : > { %v928_v0 = vcvt.s32.f32 %v926_v63  ;;  %v1006_v7 = vand.u32 65535, %v2823_v40  ;;  %v1022_v23 = vand.u32 65535, %v2835_v55  ;;  %v1038_v40 = vand.u32 65535, %v2847_v12 }
 0x14b   : > { %v2893_v16 = vcvt.s32.f32 %v1087_v15  ;;  %vm2439_vm15 = vcmp.gt.s32.totalorder %v2889_v14, 2147483647  ;;  %vm2440_vm0 = vcmp.gt.s32.totalorder %v2886_v9, 2147483647  ;;  %v944_v15 = vcvt.s32.f32 %v942_v21 }
 0x14c   : > { %v2898_v18 = vsel %vm2439_vm15, 2147483647, %v2889_v14  ;;  %v2901_v20 = vsel %vm2440_vm0, 2147483647, %v2886_v9  ;;  %v992_v43 = vcvt.s32.f32 %v990_v57  ;;  %v1008_v49 = vcvt.s32.f32 %v1006_v7 }
 0x14d   : > { %1090 = vmin.xlane.f32.xlu1 %v2893_v16  ;;  %v1119_v45 = vshra.s32 %v2898_v18, 16  ;;  %v1103_v25 = vshra.s32 %v2901_v20, 16 }
 0x14f   : > { %v2906_v26 = vcvt.s32.f32 %v1119_v45  ;;  %v2908_v28 = vcvt.s32.f32 %v1103_v25  ;;  %v960_v25 = vcvt.s32.f32 %v958_v36  ;;  %v1086_v36 = vand.u32 65535, %v2883_v31 }
 0x151   : > { %1122 = vmin.xlane.f32.xlu1 %v2906_v26  ;;  %1106 = vmin.xlane.f32.xlu0 %v2908_v28 }
 0x1a0   : > { %v2913_v39 = vpop.xlane.xlu1 %882 }
 0x1a1   : > { %vm884_vm1 = vcmp.eq.f32.partialorder %v2734_v4, %v2913_v39 }
 0x1a2   : > { %v885_v42 = vsel %vm884_vm1, %v880_v41, inf  ;;  %v976_v41 = vcvt.s32.f32 %v974_v44  ;;  %vm1132_vm1 = vcmask 7168  }
 0x1a3   : > { %886 = vmin.xlane.f32.xlu0 %v885_v42 }
 0x1a6   : > { %v2918_v47 = vpop.xlane.xlu0 %898 }
 0x1a7   : > { %vm900_vm2 = vcmp.eq.f32.partialorder %v2747_v19, %v2918_v47 }
 0x1a8   : > { %v901_v61 = vsel %vm900_vm2, %v896_v48, inf }
 0x1a9   : > { %902 = vmin.xlane.f32.xlu1 %v901_v61 }
 0x1aa   : > { %v2923_v58 = vpop.xlane.xlu0 %914 }
 0x1ab   : > { %vm916_vm3 = vcmp.eq.f32.partialorder %v2759_v34, %v2923_v58 }
 0x1ac   : > { %v917_v4 = vsel %vm916_vm3, %v912_v62, inf  ;;  %v1024_v62 = vcvt.s32.f32 %v1022_v23 }
 0x1ad   : > { %918 = vmin.xlane.f32.xlu0 %v917_v4  ;;  %v1040_v4 = vcvt.s32.f32 %v1038_v40 }
 0x1ae   : > { %v2928_v10 = vpop.xlane.xlu1 %930 }
 0x1af   : > { %vm932_vm4 = vcmp.eq.f32.partialorder %v2771_v32, %v2928_v10  ;;  %v937_v40 = vcvt.f32.s32 %v2928_v10 }
 0x1b0   : > { %v933_v19 = vsel %vm932_vm4, %v928_v0, inf  ;;  %v1070_v0 = vand.u32 65535, %v2872_v53  ;;  %v1088_v53 = vcvt.s32.f32 %v1086_v36 }
 0x1b1   : > { %934 = vmin.xlane.f32.xlu1 %v933_v19 }
 0x1b2   : > { %v2933_v2 = vpop.xlane.xlu0 %946 }
 0x1b3   : > { %vm948_vm5 = vcmp.eq.f32.partialorder %v2783_v54, %v2933_v2 }
 0x1b4   : > { %v949_v34 = vsel %vm948_vm5, %v944_v15, inf  ;;  %v1072_v15 = vcvt.s32.f32 %v1070_v0  ;;  %v953_v0 = vcvt.f32.s32 %v2933_v2 }
 0x1b5   : > { %950 = vmin.xlane.f32.xlu0 %v949_v34  ;;  %v1118_v34 = vand.u32 65535, %v2898_v18 }
 0x1b6   : > { %v2938_v45 = vpop.xlane.xlu1 %962 }
 0x1b7   : > { %vm964_vm6 = vcmp.eq.f32.partialorder %v2795_v5, %v2938_v45  ;;  %v969_v2 = vcvt.f32.s32 %v2938_v45 }
 0x1b8   : > { %v965_v32 = vsel %vm964_vm6, %v960_v25, inf  ;;  %v1102_v25 = vand.u32 65535, %v2901_v20 }
 0x1b9   : > { %966 = vmin.xlane.f32.xlu1 %v965_v32  ;;  %v1120_v32 = vcvt.s32.f32 %v1118_v34  ;;  %v970_v45 = vshll.u32 %v969_v2, 16 }
 0x1ba   : > { %v2943_v29 = vpop.xlane.xlu0 %978 }
 0x1bb   : > { %vm980_vm7 = vcmp.eq.f32.partialorder %v2807_v17, %v2943_v29 }
 0x1bc   : > { %v981_v54 = vsel %vm980_vm7, %v976_v41, inf }
 0x1bd   : > { %982 = vmin.xlane.f32.xlu0 %v981_v54 }
 0x1be   : > { %v2948_v42 = vpop.xlane.xlu1 %994 }
 0x1bf   : > { %vm996_vm8 = vcmp.eq.f32.partialorder %v2819_v38, %v2948_v42 }
 0x1c0   : > { %v997_v5 = vsel %vm996_vm8, %v992_v43, inf  ;;  %v905_v43 = vcvt.f32.s32 %v2918_v47 }
 0x1c1   : > { %998 = vmin.xlane.f32.xlu1 %v997_v5 }
 0x1c2   : > { %v2953_v48 = vpop.xlane.xlu0 %1010 }
 0x1c3   : > { %vm1012_vm9 = vcmp.eq.f32.partialorder %v2831_v50, %v2953_v48  ;;  %v1054_v50 = vand.u32 65535, %v2859_v35 }
 0x1c4   : > { %v1013_v17 = vsel %vm1012_vm9, %v1008_v49, inf  ;;  %v906_v49 = vshll.u32 %v905_v43, 16 }
 0x1c5   : > { %1014 = vmin.xlane.f32.xlu0 %v1013_v17  ;;  %v1056_v12 = vcvt.s32.f32 %v1054_v50 }
 0x1c6   : > { %v2958_v61 = vpop.xlane.xlu1 %1026 }
 0x1c7   : > { %vm1028_vm10 = vcmp.eq.f32.partialorder %v2843_v6, %v2958_v61 }
 0x1c8   : > { %v1029_v38 = vsel %vm1028_vm10, %v1024_v62, inf }
 0x1c9   : > { %1030 = vmin.xlane.f32.xlu1 %v1029_v38 }
 0x1ca   : > { %v2963_v63 = vpop.xlane.xlu0 %1042 }
 0x1cb   : > { %vm1044_vm11 = vcmp.eq.f32.partialorder %v2855_v27, %v2963_v63 }
 0x1cc   : > { %v1045_v55 = vsel %vm1044_vm11, %v1040_v4, inf }
 0x1cd   : > { %1046 = vmin.xlane.f32.xlu0 %v1045_v55  ;;  %v938_v55 = vshll.u32 %v937_v40, 16  ;;  %v1017_v40 = vcvt.f32.s32 %v2953_v48  ;;  %v1033_v48 = vcvt.f32.s32 %v2958_v61 }
 0x1cf   : > { %v2969_v21 = vpop.xlane.xlu1 %1058 }
 0x1d0   : > { %vm1060_vm12 = vcmp.eq.f32.partialorder %v2869_v52, %v2969_v21 }
 0x1d1   : > { %v1061_v6 = vsel %vm1060_vm12, %v1056_v12, inf }
 0x1d2   : > { %1062 = vmin.xlane.f32.xlu1 %v1061_v6  ;;  %v2973_v19 = vpop.xlane.xlu0 %1074 }
 0x1d3   : > { %vm1076_vm13 = vcmp.eq.f32.partialorder %v2879_v3, %v2973_v19  ;;  %v1104_v3 = vcvt.s32.f32 %v1102_v25  ;;  %v954_v25 = vshll.u32 %v953_v0, 16 }
 0x1d4   : > { %v1077_v27 = vsel %vm1076_vm13, %v1072_v15, inf }
 0x1d5   : > { %1078 = vmin.xlane.f32.xlu0 %v1077_v27 }
 0x1d6   : > { %v2978_v35 = vpop.xlane.xlu1 %1090 }
 0x1d7   : > { %vm1092_vm14 = vcmp.eq.f32.partialorder %v2893_v16, %v2978_v35  ;;  %v889_v16 = vcvt.f32.s32 %v2913_v39 }
 0x1d8   : > { %v1093_v52 = vsel %vm1092_vm14, %v1088_v53, inf }
 0x1d9   : > { %1094 = vmin.xlane.f32.xlu1 %v1093_v52  ;;  %v890_v57 = vshll.u32 %v889_v16, 16 }
 0x1da   : > { %v2984_v44 = vpop.xlane.xlu1 %1122  ;;  %v2986_v31 = vpop.xlane.xlu0 %1106 }
 0x1db   : > { %vm1124_vm15 = vcmp.eq.f32.partialorder %v2906_v26, %v2984_v44  ;;  %vm1108_vm0 = vcmp.eq.f32.partialorder %v2908_v28, %v2986_v31  ;;  %v921_v26 = vcvt.f32.s32 %v2923_v58 }
 0x1dc   : > { %v1125_v18 = vsel %vm1124_vm15, %v1120_v32, inf  ;;  %v1109_v41 = vsel %vm1108_vm0, %v1104_v3, inf }
 0x1dd   : > { %1126 = vmin.xlane.f32.xlu1 %v1125_v18  ;;  %1110 = vmin.xlane.f32.xlu0 %v1109_v41  ;;  %v922_v62 = vshll.u32 %v921_v26, 16  ;;  %v985_v41 = vcvt.f32.s32 %v2943_v29  ;;  %v1001_v29 = vcvt.f32.s32 %v2948_v42 }
 0x22c   : > { %v887_v20 = vpop.xlane.xlu0 %886 }
 0x22d   : > { %v888_v54 = vcvt.f32.s32 %v887_v20 }
 0x22f   : > { %v891_v7 = vadd.s32 %v890_v57, %v888_v54 }
 0x231   : > { %vm1150_vm2 = vcmp.eq.s32.totalorder %v2722_v51, %v891_v7  ;;  %1133 = vst.msk [vmem:[#allocation2] sm:$0xff] %vm1132_vm1, %v891_v7 }
 0x232   : > { %v903_v28 = vpop.xlane.xlu1 %902  ;;  %v2998_v5 = vsel %vm1150_vm2, 2147483647, %v2722_v51 }
 0x233   : > { %v904_v23 = vcvt.f32.s32 %v903_v28  ;;  %vm2442_vm3 = vcmp.gt.s32.totalorder %v2998_v5, 2147483647 }
 0x234   : > { %v3002_v39 = vsel %vm2442_vm3, 2147483647, %v2998_v5 }
 0x235   : > { %v907_v17 = vadd.s32 %v906_v49, %v904_v23  ;;  %v1216_v47 = vshra.s32 %v3002_v39, 16  ;;  %v986_v49 = vshll.u32 %v985_v41, 16 }
 0x236   : > { %v919_v38 = vpop.xlane.xlu0 %918 }
 0x237   : > { %v920_v4 = vcvt.f32.s32 %v919_v38  ;;  %v3006_v58 = vcvt.s32.f32 %v1216_v47  ;;  %vm1152_vm4 = vcmp.eq.s32.totalorder %v2732_v1, %v907_v17  ;;  %1134 = vst.msk [vmem:[#allocation2 + $0x8] sm:$0xff] %vm1132_vm1, %v907_v17 }
 0x238   : > { %v3011_v51 = vsel %vm1152_vm4, 2147483647, %v2732_v1 }
 0x239   : > { %v923_v50 = vadd.s32 %v922_v62, %v920_v4  ;;  %1219 = vmin.xlane.f32.xlu0 %v3006_v58  ;;  %vm2444_vm5 = vcmp.gt.s32.totalorder %v3011_v51, 2147483647  ;;  %v1002_v62 = vshll.u32 %v1001_v29, 16 }
 0x23a   : > { %v935_v10 = vpop.xlane.xlu1 %934  ;;  %v3017_v12 = vsel %vm2444_vm5, 2147483647, %v3011_v51 }
 0x23b   : > { %v936_v6 = vcvt.f32.s32 %v935_v10  ;;  %v1232_v15 = vshra.s32 %v3017_v12, 16  ;;  %vm1154_vm6 = vcmp.eq.s32.totalorder %v2743_v11, %v923_v50  ;;  %1135 = vst.msk [vmem:[#allocation2 + $0x10] sm:$0xff] %vm1132_vm1, %v923_v50 }
 0x23c   : > { %v3023_v1 = vsel %vm1154_vm6, 2147483647, %v2743_v11 }
 0x23d   : > { %v939_v36 = vadd.s32 %v938_v55, %v936_v6  ;;  %v3025_v27 = vcvt.s32.f32 %v1232_v15  ;;  %vm2446_vm7 = vcmp.gt.s32.totalorder %v3023_v1, 2147483647 }
 0x23e   : > { %v951_v53 = vpop.xlane.xlu0 %950  ;;  %v3030_v34 = vsel %vm2446_vm7, 2147483647, %v3023_v1 }
 0x23f   : > { %v952_v52 = vcvt.f32.s32 %v951_v53  ;;  %1235 = vmin.xlane.f32.xlu1 %v3025_v27  ;;  %v1248_v32 = vshra.s32 %v3030_v34, 16  ;;  %1136 = vst.msk [vmem:[#allocation2 + $0x18] sm:$0xff] %vm1132_vm1, %v939_v36  ;;  %vm1156_vm8 = vcmp.eq.s32.totalorder %v2754_v22, %v939_v36  ;;  %v1018_v36 = vshll.u32 %v1017_v40, 16 }
 0x240   : > { %v3039_v18 = vsel %vm1156_vm8, 2147483647, %v2754_v22 }
 0x241   : > { %v955_v11 = vadd.s32 %v954_v25, %v952_v52  ;;  %v3036_v3 = vcvt.s32.f32 %v1248_v32  ;;  %vm2448_vm9 = vcmp.gt.s32.totalorder %v3039_v18, 2147483647  ;;  %v1034_v52 = vshll.u32 %v1033_v48, 16 }
 0x242   : > { %v967_v16 = vpop.xlane.xlu1 %966  ;;  %v3045_v57 = vsel %vm2448_vm9, 2147483647, %v3039_v18  ;;  %v1049_v32 = vcvt.f32.s32 %v2963_v63 }
 0x243   : > { %v968_v20 = vcvt.f32.s32 %v967_v16  ;;  %1251 = vmin.xlane.f32.xlu0 %v3036_v3  ;;  %vm1158_vm10 = vcmp.eq.s32.totalorder %v2766_v37, %v955_v11  ;;  %1137 = vst.msk [vmem:[#allocation2 + $0x20] sm:$0xff] %vm1132_vm1, %v955_v11  ;;  %v1264_v54 = vshra.s32 %v3045_v57, 16  ;;  %v3106_v16 = vld [vmem:[#allocation2 + $0x48] sm:$0xff] }
 0x244   : > { %v3051_v22 = vsel %vm1158_vm10, 2147483647, %v2766_v37 }
 0x245   : > { %v971_v43 = vadd.s32 %v970_v45, %v968_v20  ;;  %vm2450_vm11 = vcmp.gt.s32.totalorder %v3051_v22, 2147483647  ;;  %v3055_v26 = vcvt.s32.f32 %v1264_v54 }
 0x246   : > { %v983_v7 = vpop.xlane.xlu0 %982  ;;  %v3058_v28 = vsel %vm2450_vm11, 2147483647, %v3051_v22 }
 0x247   : > { %v984_v23 = vcvt.f32.s32 %v983_v7  ;;  %v1280_v17 = vshra.s32 %v3058_v28, 16  ;;  %1138 = vst.msk [vmem:[#allocation2 + $0x28] sm:$0xff] %vm1132_vm1, %v971_v43  ;;  %1267 = vmin.xlane.f32.xlu1 %v3055_v26  ;;  %vm1160_vm12 = vcmp.eq.s32.totalorder %v2778_v46, %v971_v43 }
 0x248   : > { %v3067_v42 = vsel %vm1160_vm12, 2147483647, %v2778_v46 }
 0x249   : > { %v987_v37 = vadd.s32 %v986_v49, %v984_v23  ;;  %v3064_v47 = vcvt.s32.f32 %v1280_v17  ;;  %vm2452_vm13 = vcmp.gt.s32.totalorder %v3067_v42, 2147483647  ;;  %v1050_v49 = vshll.u32 %v1049_v32, 16 }
 0x24a   : > { %v999_v38 = vpop.xlane.xlu1 %998  ;;  %v3073_v50 = vsel %vm2452_vm13, 2147483647, %v3067_v42 }
 0x24b   : > { %v1000_v4 = vcvt.f32.s32 %v999_v38  ;;  %1283 = vmin.xlane.f32.xlu0 %v3064_v47  ;;  %vm1162_vm14 = vcmp.eq.s32.totalorder %v2790_v59, %v987_v37  ;;  %1139 = vst.msk [vmem:[#allocation2 + $0x30] sm:$0xff] %vm1132_vm1, %v987_v37  ;;  %v1296_v55 = vshra.s32 %v3073_v50, 16 }
 0x24c   : > { %v3079_v46 = vsel %vm1162_vm14, 2147483647, %v2790_v59 }
 0x24d   : > { %v1003_v0 = vadd.s32 %v1002_v62, %v1000_v4  ;;  %vm2454_vm15 = vcmp.gt.s32.totalorder %v3079_v46, 2147483647  ;;  %v3083_v6 = vcvt.s32.f32 %v1296_v55  ;;  %v1081_v4 = vcvt.f32.s32 %v2973_v19 }
 0x24e   : > { %v1015_v10 = vpop.xlane.xlu0 %1014  ;;  %v3086_v15 = vsel %vm2454_vm15, 2147483647, %v3079_v46  ;;  %v1097_v19 = vcvt.f32.s32 %v2978_v35 }
 0x24f   : > { %v1016_v2 = vcvt.f32.s32 %v1015_v10  ;;  %v1312_v53 = vshra.s32 %v3086_v15, 16  ;;  %1140 = vst.msk [vmem:[#allocation2 + $0x38] sm:$0xff] %vm1132_vm1, %v1003_v0  ;;  %1299 = vmin.xlane.f32.xlu1 %v3083_v6  ;;  %vm1164_vm0 = vcmp.eq.s32.totalorder %v2802_v8, %v1003_v0 }
 0x250   : > { %v3095_v61 = vsel %vm1164_vm0, 2147483647, %v2802_v8 }
 0x251   : > { %v1019_v59 = vadd.s32 %v1018_v36, %v1016_v2  ;;  %v3092_v25 = vcvt.s32.f32 %v1312_v53  ;;  %vm2456_vm2 = vcmp.gt.s32.totalorder %v3095_v61, 2147483647 }
 0x252   : > { %v1031_v11 = vpop.xlane.xlu1 %1030  ;;  %v3101_v41 = vsel %vm2456_vm2, 2147483647, %v3095_v61 }
 0x253   : > { %v1032_v45 = vcvt.f32.s32 %v1031_v11  ;;  %1315 = vmin.xlane.f32.xlu0 %v3092_v25  ;;  %vm2457_vm3 = vcmp.eq.s32.totalorder %v1019_v59, 2147483647  ;;  %vm1166_vm4 = vcmp.eq.s32.totalorder %v2814_v24, %v1019_v59  ;;  %1141 = vst.msk [vmem:[#allocation2 + $0x40] sm:$0xff] %vm1132_vm1, %v1019_v59  ;;  %v1328_v8 = vshra.s32 %v3101_v41, 16 }
 0x254   : > { %v3109_v63 = vsel %vm2457_vm3, 2147483647, %v3106_v16  ;;  %v3112_v20 = vsel %vm1166_vm4, 2147483647, %v2814_v24  ;;  %v1065_v24 = vcvt.f32.s32 %v2969_v21 }
 0x255   : > { %v1035_v54 = vadd.s32 %v1034_v52, %v1032_v45  ;;  %vm1341_vm5 = vcmp.lt.s32.totalorder %v3109_v63, %v3112_v20  ;;  %v3116_v29 = vcvt.s32.f32 %v1328_v8  ;;  %v1082_v52 = vshll.u32 %v1081_v4, 16 }
 0x256   : > { %v1047_v43 = vpop.xlane.xlu0 %1046  ;;  %v3120_v7 = vsel %vm1341_vm5, %v3109_v63, %v3112_v20 }
 0x257   : > { %v1048_v23 = vcvt.f32.s32 %v1047_v43  ;;  %v1344_v17 = vshra.s32 %v3120_v7, 16  ;;  %vm1167_vm6 = vcmp.eq.s32.totalorder %v3106_v16, %v1035_v54  ;;  %1142 = vst.msk [vmem:[#allocation2 + $0x48] sm:$0xff] %vm1132_vm1, %v1035_v54  ;;  %1331 = vmin.xlane.f32.xlu1 %v3116_v29  ;;  %vm1168_vm7 = vcmp.eq.s32.totalorder %v2826_v33, %v1035_v54 }
 0x258   : > { %v3129_v37 = vsel %vm1167_vm6, 2147483647, %v3106_v16  ;;  %v3134_v38 = vsel %vm1168_vm7, 2147483647, %v2826_v33  ;;  %v1066_v33 = vshll.u32 %v1065_v24, 16  ;;  %v1129_v43 = vcvt.f32.s32 %v2984_v44 }
 0x259   : > { %v1051_v62 = vadd.s32 %v1050_v49, %v1048_v23  ;;  %v3131_v40 = vcvt.s32.f32 %v1344_v17  ;;  %vm1357_vm8 = vcmp.lt.s32.totalorder %v3129_v37, %v3134_v38  ;;  %v1113_v49 = vcvt.f32.s32 %v2986_v31 }
 0x25a   : > { %v3142_v21 = vsel %vm1357_vm8, %v3129_v37, %v3134_v38 }
 0x25b   : > { %v1063_v55 = vpop.xlane.xlu1 %1062  ;;  %1347 = vmin.xlane.f32.xlu0 %v3131_v40  ;;  %vm1169_vm9 = vcmp.eq.s32.totalorder %v3106_v16, %v1051_v62  ;;  %vm1170_vm10 = vcmp.eq.s32.totalorder %v2838_v56, %v1051_v62  ;;  %1143 = vst.msk [vmem:[#allocation2 + $0x50] sm:$0xff] %vm1132_vm1, %v1051_v62  ;;  %v1360_v48 = vshra.s32 %v3142_v21, 16 }
 0x25c   : > { %v1064_v0 = vcvt.f32.s32 %v1063_v55  ;;  %v3149_v10 = vsel %vm1169_vm9, 2147483647, %v3106_v16  ;;  %v3153_v36 = vsel %vm1170_vm10, 2147483647, %v2838_v56  ;;  %v1098_v56 = vshll.u32 %v1097_v19, 16 }
 0x25d   : > { %v3155_v59 = vcvt.s32.f32 %v1360_v48  ;;  %vm1373_vm11 = vcmp.lt.s32.totalorder %v3149_v10, %v3153_v36  ;;  %v1130_v55 = vshll.u32 %v1129_v43, 16 }
 0x25e   : > { %v1067_v2 = vadd.s32 %v1066_v33, %v1064_v0  ;;  %v1079_v53 = vpop.xlane.xlu0 %1078  ;;  %v3161_v11 = vsel %vm1373_vm11, %v3149_v10, %v3153_v36 }
 0x25f   : > { %v1080_v32 = vcvt.f32.s32 %v1079_v53  ;;  %1363 = vmin.xlane.f32.xlu1 %v3155_v59  ;;  %v1376_v35 = vshra.s32 %v3161_v11, 16 }
 0x260   : > { %vm1171_vm12 = vcmp.eq.s32.totalorder %v3106_v16, %v1067_v2  ;;  %vm1172_vm13 = vcmp.eq.s32.totalorder %v2850_v13, %v1067_v2  ;;  %1144 = vst.msk [vmem:[#allocation2 + $0x58] sm:$0xff] %vm1132_vm1, %v1067_v2  ;;  %v1114_v2 = vshll.u32 %v1113_v49, 16 }
 0x261   : > { %v1083_v45 = vadd.s32 %v1082_v52, %v1080_v32  ;;  %v3169_v8 = vsel %vm1171_vm12, 2147483647, %v3106_v16  ;;  %v3172_v54 = vsel %vm1172_vm13, 2147483647, %v2850_v13  ;;  %v3176_v17 = vcvt.s32.f32 %v1376_v35 }
 0x262   : > { %v1095_v23 = vpop.xlane.xlu1 %1094  ;;  %vm1389_vm14 = vcmp.lt.s32.totalorder %v3169_v8, %v3172_v54 }
 0x263   : > { %v1096_v24 = vcvt.f32.s32 %v1095_v23  ;;  %v3182_v62 = vsel %vm1389_vm14, %v3169_v8, %v3172_v54  ;;  %vm1173_vm15 = vcmp.eq.s32.totalorder %v3106_v16, %v1083_v45  ;;  %vm1174_vm0 = vcmp.eq.s32.totalorder %v2862_v30, %v1083_v45  ;;  %1145 = vst.msk [vmem:[#allocation2 + $0x60] sm:$0xff] %vm1132_vm1, %v1083_v45  ;;  %1379 = vmin.xlane.f32.xlu0 %v3176_v17 }
 0x264   : > { %v1392_v13 = vshra.s32 %v3182_v62, 16  ;;  %v3190_v44 = vsel %vm1173_vm15, 2147483647, %v3106_v16  ;;  %v3193_v31 = vsel %vm1174_vm0, 2147483647, %v2862_v30 }
 0x265   : > { %v1099_v4 = vadd.s32 %v1098_v56, %v1096_v24  ;;  %vm1405_vm2 = vcmp.lt.s32.totalorder %v3190_v44, %v3193_v31 }
 0x266   : > { %v1127_v33 = vpop.xlane.xlu1 %1126  ;;  %v1111_v0 = vpop.xlane.xlu0 %1110  ;;  %v3197_v48 = vcvt.s32.f32 %v1392_v13  ;;  %v3201_v19 = vsel %vm1405_vm2, %v3190_v44, %v3193_v31 }
 0x267   : > { %v1128_v53 = vcvt.f32.s32 %v1127_v33  ;;  %v1112_v52 = vcvt.f32.s32 %v1111_v0  ;;  %v1408_v32 = vshra.s32 %v3201_v19, 16  ;;  %1146 = vst.msk [vmem:[#allocation2 + $0x68] sm:$0xff] %vm1132_vm1, %v1099_v4  ;;  %vm1175_vm3 = vcmp.eq.s32.totalorder %v3106_v16, %v1099_v4 }
 0x268   : > { %1395 = vmin.xlane.f32.xlu1 %v3197_v48  ;;  %vm1176_vm4 = vcmp.eq.s32.totalorder %v2875_v60, %v1099_v4  ;;  %v3211_v45 = vsel %vm1175_vm3, 2147483647, %v3106_v16 }
 0x269   : > { %v1131_v30 = vadd.s32 %v1130_v55, %v1128_v53  ;;  %v1115_v35 = vadd.s32 %v1114_v2, %v1112_v52  ;;  %v3208_v56 = vcvt.s32.f32 %v1408_v32  ;;  %v3214_v43 = vsel %vm1176_vm4, 2147483647, %v2875_v60 }
 0x26a   : > { %vm1421_vm7 = vcmp.lt.s32.totalorder %v3211_v45, %v3214_v43 }
 0x26b   : > { %vm1179_vm5 = vcmp.eq.s32.totalorder %v3106_v16, %v1131_v30  ;;  %vm1180_vm6 = vcmp.eq.s32.totalorder %v2889_v14, %v1131_v30  ;;  %1411 = vmin.xlane.f32.xlu0 %v3208_v56  ;;  %vm1177_vm8 = vcmp.eq.s32.totalorder %v3106_v16, %v1115_v35  ;;  %1147 = vst.msk [vmem:[#allocation2 + $0x70] sm:$0xff] %vm1132_vm1, %v1115_v35  ;;  %1148 = vst.msk [vmem:[#allocation2 + $0x78] sm:$0xff] %vm1132_vm1, %v1131_v30 }
 0x26c   : > { %v3226_v49 = vsel %vm1421_vm7, %v3211_v45, %v3214_v43  ;;  %v3229_v60 = vsel %vm1179_vm5, 2147483647, %v3106_v16  ;;  %v3232_v23 = vsel %vm1180_vm6, 2147483647, %v2889_v14  ;;  %vm1178_vm9 = vcmp.eq.s32.totalorder %v2886_v9, %v1115_v35 }
 0x26d   : > { %v1424_v24 = vshra.s32 %v3226_v49, 16  ;;  %vm1453_vm10 = vcmp.lt.s32.totalorder %v3229_v60, %v3232_v23  ;;  %v3239_v13 = vsel %vm1177_vm8, 2147483647, %v3106_v16  ;;  %v3246_v55 = vsel %vm1178_vm9, 2147483647, %v2886_v9 }
 0x26e   : > { %4008 = vst [vmem:[#allocation3_spill] sm:$0xff] %v3239_v13  ;;  %v3243_v4 = vsel %vm1453_vm10, %v3229_v60, %v3232_v23  ;;  %4009 = vst [vmem:[#allocation4_spill] sm:$0xff] %v3246_v55  ;;  %vm1437_vm1 = vcmp.lt.s32.totalorder %v3239_v13, %v3246_v55  ;;  %v1215_v9 = vand.u32 65535, %v3002_v39  ;;  %v1231_v35 = vand.u32 65535, %v3017_v12 }
 0x26f   : > { %v3248_v33 = vcvt.s32.f32 %v1424_v24  ;;  %v1456_v14 = vshra.s32 %v3243_v4, 16  ;;  %v3255_v0 = vsel %vm1437_vm1, %v3239_v13, %v3246_v55  ;;  %v1247_v24 = vand.u32 65535, %v3030_v34 }
 0x270   : > { %v1440_v2 = vshra.s32 %v3255_v0, 16  ;;  %v1217_v32 = vcvt.s32.f32 %v1215_v9  ;;  %v1263_v13 = vand.u32 65535, %v3045_v57  ;;  %v1279_v12 = vand.u32 65535, %v3058_v28 }
 0x271   : > { %1427 = vmin.xlane.f32.xlu1 %v3248_v33  ;;  %v3258_v16 = vcvt.s32.f32 %v1456_v14  ;;  %v1249_v9 = vcvt.s32.f32 %v1247_v24  ;;  %v1295_v57 = vand.u32 65535, %v3073_v50  ;;  %v1311_v28 = vand.u32 65535, %v3086_v15 }
 0x272   : > { %v3261_v53 = vcvt.s32.f32 %v1440_v2  ;;  %v1233_v2 = vcvt.s32.f32 %v1231_v35  ;;  %v1327_v50 = vand.u32 65535, %v3101_v41  ;;  %v1343_v15 = vand.u32 65535, %v3120_v7 }
 0x273   : > { %v1359_v41 = vand.u32 65535, %v3142_v21  ;;  %v1375_v7 = vand.u32 65535, %v3161_v11 }
 0x274   : > { %1443 = vmin.xlane.f32.xlu0 %v3261_v53 }
 0x275   : > { %1459 = vmin.xlane.f32.xlu1 %v3258_v16  ;;  %v1377_v21 = vcvt.s32.f32 %v1375_v7 }
 0x2c2   : > { %v3266_v52 = vpop.xlane.xlu0 %1219 }
 0x2c3   : > { %vm1221_vm11 = vcmp.eq.f32.partialorder %v3006_v58, %v3266_v52 }
 0x2c4   : > { %v1222_v30 = vsel %vm1221_vm11, %v1217_v32, inf  ;;  %v1265_v32 = vcvt.s32.f32 %v1263_v13  ;;  %v1297_v13 = vcvt.s32.f32 %v1295_v57  ;;  %v1391_v57 = vand.u32 65535, %v3182_v62 }
 0x2c5   : > { %1223 = vmin.xlane.f32.xlu0 %v1222_v30  ;;  %v1281_v30 = vcvt.s32.f32 %v1279_v12  ;;  %vm1469_vm11 = vcmask 15368  }
 0x2c8   : > { %v3272_v14 = vpop.xlane.xlu1 %1235 }
 0x2c9   : > { %vm1237_vm12 = vcmp.eq.f32.partialorder %v3025_v27, %v3272_v14  ;;  %v1242_v7 = vcvt.f32.s32 %v3272_v14 }
 0x2ca   : > { %v1238_v55 = vsel %vm1237_vm12, %v1233_v2, inf  ;;  %v1313_v2 = vcvt.s32.f32 %v1311_v28  ;;  %v1407_v28 = vand.u32 65535, %v3201_v19  ;;  %v1455_v19 = vand.u32 65535, %v3243_v4 }
 0x2cb   : > { %1239 = vmin.xlane.f32.xlu1 %v1238_v55 }
 0x2cc   : > { %v3276_v39 = vpop.xlane.xlu0 %1251  ;;  %v1409_v62 = vcvt.s32.f32 %v1407_v28 }
 0x2cd   : > { %vm1253_vm13 = vcmp.eq.f32.partialorder %v3036_v3, %v3276_v39 }
 0x2ce   : > { %v1254_v58 = vsel %vm1253_vm13, %v1249_v9, inf }
 0x2cf   : > { %1255 = vmin.xlane.f32.xlu0 %v1254_v58  ;;  %v1329_v58 = vcvt.s32.f32 %v1327_v50  ;;  %v1439_v50 = vand.u32 65535, %v3255_v0 }
 0x2d0   : > { %v3282_v34 = vpop.xlane.xlu1 %1267 }
 0x2d1   : > { %vm1269_vm14 = vcmp.eq.f32.partialorder %v3055_v26, %v3282_v34 }
 0x2d2   : > { %v1270_v27 = vsel %vm1269_vm14, %v1265_v32, inf  ;;  %v1345_v32 = vcvt.s32.f32 %v1343_v15 }
 0x2d3   : > { %1271 = vmin.xlane.f32.xlu1 %v1270_v27 }
 0x2d4   : > { %v3286_v55 = vpop.xlane.xlu0 %1283 }
 0x2d5   : > { %vm1285_vm15 = vcmp.eq.f32.partialorder %v3064_v47, %v3286_v55 }
 0x2d6   : > { %v1286_v3 = vsel %vm1285_vm15, %v1281_v30, inf  ;;  %v1361_v30 = vcvt.s32.f32 %v1359_v41 }
 0x2d7   : > { %1287 = vmin.xlane.f32.xlu0 %v1286_v3 }
 0x2d8   : > { %v3292_v35 = vpop.xlane.xlu1 %1299 }
 0x2d9   : > { %vm1301_vm0 = vcmp.eq.f32.partialorder %v3083_v6, %v3292_v35 }
 0x2da   : > { %v1302_v26 = vsel %vm1301_vm0, %v1297_v13, inf  ;;  %v1393_v13 = vcvt.s32.f32 %v1391_v57  ;;  %v1243_v57 = vshll.u32 %v1242_v7, 16 }
 0x2db   : > { %1303 = vmin.xlane.f32.xlu1 %v1302_v26 }
 0x2dc   : > { %v3296_v24 = vpop.xlane.xlu0 %1315 }
 0x2dd   : > { %vm1317_vm2 = vcmp.eq.f32.partialorder %v3092_v25, %v3296_v24 }
 0x2de   : > { %v1318_v47 = vsel %vm1317_vm2, %v1313_v2, inf }
 0x2df   : > { %1319 = vmin.xlane.f32.xlu0 %v1318_v47 }
 0x2e0   : > { %v3302_v9 = vpop.xlane.xlu1 %1331 }
 0x2e1   : > { %vm1333_vm3 = vcmp.eq.f32.partialorder %v3116_v29, %v3302_v9 }
 0x2e2   : > { %v1334_v6 = vsel %vm1333_vm3, %v1329_v58, inf }
 0x2e3   : > { %1335 = vmin.xlane.f32.xlu1 %v1334_v6 }
 0x2e4   : > { %v3306_v12 = vpop.xlane.xlu0 %1347 }
 0x2e5   : > { %vm1349_vm4 = vcmp.eq.f32.partialorder %v3131_v40, %v3306_v12 }
 0x2e6   : > { %v1350_v25 = vsel %vm1349_vm4, %v1345_v32, inf }
 0x2e7   : > { %1351 = vmin.xlane.f32.xlu0 %v1350_v25 }
 0x2e8   : > { %v3312_v27 = vpop.xlane.xlu1 %1363 }
 0x2e9   : > { %vm1365_vm5 = vcmp.eq.f32.partialorder %v3155_v59, %v3312_v27 }
 0x2ea   : > { %v1366_v29 = vsel %vm1365_vm5, %v1361_v30, inf }
 0x2eb   : > { %1367 = vmin.xlane.f32.xlu1 %v1366_v29 }
 0x2ec   : > { %v3317_v3 = vpop.xlane.xlu0 %1379 }
 0x2ed   : > { %vm1381_vm6 = vcmp.eq.f32.partialorder %v3176_v17, %v3317_v3  ;;  %v1423_v17 = vand.u32 65535, %v3226_v49  ;;  %v1441_v49 = vcvt.s32.f32 %v1439_v50 }
 0x2ee   : > { %v1382_v40 = vsel %vm1381_vm6, %v1377_v21, inf }
 0x2ef   : > { %1383 = vmin.xlane.f32.xlu0 %v1382_v40  ;;  %v1425_v15 = vcvt.s32.f32 %v1423_v17 }
 0x2f1   : > { %v3322_v11 = vpop.xlane.xlu1 %1395 }
 0x2f2   : > { %vm1397_vm7 = vcmp.eq.f32.partialorder %v3197_v48, %v3322_v11 }
 0x2f3   : > { %v1398_v59 = vsel %vm1397_vm7, %v1393_v13, inf }
 0x2f4   : > { %1399 = vmin.xlane.f32.xlu1 %v1398_v59  ;;  %v3326_v26 = vpop.xlane.xlu0 %1411  ;;  %v1274_v59 = vcvt.f32.s32 %v3282_v34 }
 0x2f5   : > { %vm1413_vm8 = vcmp.eq.f32.partialorder %v3208_v56, %v3326_v26  ;;  %v1457_v56 = vcvt.s32.f32 %v1455_v19  ;;  %v1290_v19 = vcvt.f32.s32 %v3286_v55 }
 0x2f6   : > { %v1414_v2 = vsel %vm1413_vm8, %v1409_v62, inf }
 0x2f7   : > { %1415 = vmin.xlane.f32.xlu0 %v1414_v2 }
 0x2fa   : > { %v3333_v47 = vpop.xlane.xlu1 %1427 }
 0x2fb   : > { %vm1429_vm9 = vcmp.eq.f32.partialorder %v3248_v33, %v3333_v47  ;;  %v1226_v33 = vcvt.f32.s32 %v3266_v52 }
 0x2fc   : > { %v1430_v48 = vsel %vm1429_vm9, %v1425_v15, inf  ;;  %v1275_v15 = vshll.u32 %v1274_v59, 16 }
 0x2fd   : > { %1431 = vmin.xlane.f32.xlu1 %v1430_v48  ;;  %v3339_v6 = vpop.xlane.xlu0 %1443  ;;  %v1227_v41 = vshll.u32 %v1226_v33, 16  ;;  %v1291_v33 = vshll.u32 %v1290_v19, 16 }
 0x2fe   : > { %v3337_v58 = vpop.xlane.xlu1 %1459  ;;  %vm1445_vm1 = vcmp.eq.f32.partialorder %v3261_v53, %v3339_v6 }
 0x2ff   : > { %vm1461_vm10 = vcmp.eq.f32.partialorder %v3258_v16, %v3337_v58  ;;  %v1446_v0 = vsel %vm1445_vm1, %v1441_v49, inf  ;;  %v1258_v16 = vcvt.f32.s32 %v3276_v39  ;;  %v1306_v49 = vcvt.f32.s32 %v3292_v35 }
 0x300   : > { %v1462_v4 = vsel %vm1461_vm10, %v1457_v56, inf  ;;  %1447 = vmin.xlane.f32.xlu0 %v1446_v0 }
 0x301   : > { %1463 = vmin.xlane.f32.xlu1 %v1462_v4  ;;  %v1259_v28 = vshll.u32 %v1258_v16, 16  ;;  %v1307_v7 = vshll.u32 %v1306_v49, 16 }
 0x34e   : > { %v1224_v32 = vpop.xlane.xlu0 %1223 }
 0x34f   : > { %v1225_v25 = vcvt.f32.s32 %v1224_v32 }
 0x351   : > { %v1228_v30 = vadd.s32 %v1227_v41, %v1225_v25 }
 0x353   : > { %1470 = vst.msk [vmem:[#allocation2] sm:$0xff] %vm1469_vm11, %v1228_v30  ;;  %vm1487_vm12 = vcmp.eq.s32.totalorder %v2998_v5, %v1228_v30  ;;  %v1322_v30 = vcvt.f32.s32 %v3296_v24  ;;  %v1338_v24 = vcvt.f32.s32 %v3302_v9 }
 0x354   : > { %v3351_v53 = vsel %vm1487_vm12, 2147483647, %v2998_v5  ;;  %v1240_v29 = vpop.xlane.xlu1 %1239 }
 0x355   : > { %v1241_v21 = vcvt.f32.s32 %v1240_v29  ;;  %vm2459_vm13 = vcmp.gt.s32.totalorder %v3351_v53, 2147483647 }
 0x356   : > { %v3355_v52 = vsel %vm2459_vm13, 2147483647, %v3351_v53 }
 0x357   : > { %v1244_v40 = vadd.s32 %v1243_v57, %v1241_v21  ;;  %v1553_v14 = vshra.s32 %v3355_v52, 16 }
 0x358   : > { %v1256_v13 = vpop.xlane.xlu0 %1255 }
 0x359   : > { %1471 = vst.msk [vmem:[#allocation2 + $0x8] sm:$0xff] %vm1469_vm11, %v1244_v40  ;;  %vm1489_vm14 = vcmp.eq.s32.totalorder %v3011_v51, %v1244_v40  ;;  %v1257_v39 = vcvt.f32.s32 %v1256_v13  ;;  %v3360_v5 = vcvt.s32.f32 %v1553_v14 }
 0x35a   : > { %v3364_v62 = vsel %vm1489_vm14, 2147483647, %v3011_v51 }
 0x35b   : > { %v1260_v17 = vadd.s32 %v1259_v28, %v1257_v39  ;;  %1556 = vmin.xlane.f32.xlu0 %v3360_v5  ;;  %vm2461_vm15 = vcmp.gt.s32.totalorder %v3364_v62, 2147483647  ;;  %v1323_v39 = vshll.u32 %v1322_v30, 16 }
 0x35c   : > { %v3369_v2 = vsel %vm2461_vm15, 2147483647, %v3364_v62  ;;  %v1272_v50 = vpop.xlane.xlu1 %1271 }
 0x35d   : > { %1472 = vst.msk [vmem:[#allocation2 + $0x10] sm:$0xff] %vm1469_vm11, %v1260_v17  ;;  %vm1491_vm0 = vcmp.eq.s32.totalorder %v3023_v1, %v1260_v17  ;;  %v1569_v34 = vshra.s32 %v3369_v2, 16  ;;  %v1273_v48 = vcvt.f32.s32 %v1272_v50  ;;  %v1339_v50 = vshll.u32 %v1338_v24, 16 }
 0x35e   : > { %v3376_v51 = vsel %vm1491_vm0, 2147483647, %v3023_v1 }
 0x35f   : > { %v3378_v56 = vcvt.s32.f32 %v1569_v34  ;;  %vm2463_vm2 = vcmp.gt.s32.totalorder %v3376_v51, 2147483647  ;;  %v1276_v4 = vadd.s32 %v1275_v15, %v1273_v48  ;;  %v1354_v34 = vcvt.f32.s32 %v3306_v12 }
 0x360   : > { %v1288_v55 = vpop.xlane.xlu0 %1287  ;;  %v3383_v0 = vsel %vm2463_vm2, 2147483647, %v3376_v51  ;;  %v1370_v12 = vcvt.f32.s32 %v3312_v27 }
 0x361   : > { %v1289_v32 = vcvt.f32.s32 %v1288_v55  ;;  %1572 = vmin.xlane.f32.xlu1 %v3378_v56  ;;  %v1585_v41 = vshra.s32 %v3383_v0, 16  ;;  %1473 = vst.msk [vmem:[#allocation2 + $0x18] sm:$0xff] %vm1469_vm11, %v1276_v4  ;;  %vm1493_vm3 = vcmp.eq.s32.totalorder %v3039_v18, %v1276_v4 }
 0x362   : > { %v3390_v1 = vsel %vm1493_vm3, 2147483647, %v3039_v18 }
 0x363   : > { %v1292_v25 = vadd.s32 %v1291_v33, %v1289_v32  ;;  %v3392_v35 = vcvt.s32.f32 %v1585_v41  ;;  %vm2465_vm4 = vcmp.gt.s32.totalorder %v3390_v1, 2147483647 }
 0x364   : > { %v1304_v16 = vpop.xlane.xlu1 %1303  ;;  %v3400_v29 = vsel %vm2465_vm4, 2147483647, %v3390_v1 }
 0x365   : > { %1474 = vst.msk [vmem:[#allocation2 + $0x20] sm:$0xff] %vm1469_vm11, %v1292_v25  ;;  %vm1495_vm5 = vcmp.eq.s32.totalorder %v3051_v22, %v1292_v25  ;;  %1588 = vmin.xlane.f32.xlu0 %v3392_v35  ;;  %v1305_v57 = vcvt.f32.s32 %v1304_v16  ;;  %v1601_v21 = vshra.s32 %v3400_v29, 16  ;;  %v1355_v25 = vshll.u32 %v1354_v34, 16 }
 0x366   : > { %v3403_v18 = vsel %vm1495_vm5, 2147483647, %v3051_v22 }
 0x367   : > { %vm2467_vm6 = vcmp.gt.s32.totalorder %v3403_v18, 2147483647  ;;  %v1308_v40 = vadd.s32 %v1307_v7, %v1305_v57  ;;  %v3408_v28 = vcvt.s32.f32 %v1601_v21  ;;  %v1371_v57 = vshll.u32 %v1370_v12, 16 }
 0x368   : > { %v1320_v14 = vpop.xlane.xlu0 %1319  ;;  %v3411_v13 = vsel %vm2467_vm6, 2147483647, %v3403_v18  ;;  %v1386_v21 = vcvt.f32.s32 %v3317_v3 }
 0x369   : > { %v1321_v59 = vcvt.f32.s32 %v1320_v14  ;;  %v1617_v17 = vshra.s32 %v3411_v13, 16  ;;  %1475 = vst.msk [vmem:[#allocation2 + $0x28] sm:$0xff] %vm1469_vm11, %v1308_v40  ;;  %vm1497_vm7 = vcmp.eq.s32.totalorder %v3067_v42, %v1308_v40  ;;  %1604 = vmin.xlane.f32.xlu1 %v3408_v28 }
 0x36a   : > { %v3418_v22 = vsel %vm1497_vm7, 2147483647, %v3067_v42 }
 0x36b   : > { %v1324_v9 = vadd.s32 %v1323_v39, %v1321_v59  ;;  %v3420_v19 = vcvt.s32.f32 %v1617_v17  ;;  %vm2469_vm8 = vcmp.gt.s32.totalorder %v3418_v22, 2147483647 }
 0x36c   : > { %v1336_v15 = vpop.xlane.xlu1 %1335  ;;  %v3428_v48 = vsel %vm2469_vm8, 2147483647, %v3418_v22 }
 0x36d   : > { %1476 = vst.msk [vmem:[#allocation2 + $0x30] sm:$0xff] %vm1469_vm11, %v1324_v9  ;;  %vm1499_vm9 = vcmp.eq.s32.totalorder %v3079_v46, %v1324_v9  ;;  %1620 = vmin.xlane.f32.xlu0 %v3420_v19  ;;  %v1337_v49 = vcvt.f32.s32 %v1336_v15  ;;  %v1633_v4 = vshra.s32 %v3428_v48, 16 }
 0x36e   : > { %v3431_v42 = vsel %vm1499_vm9, 2147483647, %v3079_v46 }
 0x36f   : > { %vm2471_vm10 = vcmp.gt.s32.totalorder %v3431_v42, 2147483647  ;;  %v1340_v55 = vadd.s32 %v1339_v50, %v1337_v49  ;;  %v3436_v32 = vcvt.s32.f32 %v1633_v4  ;;  %v1402_v50 = vcvt.f32.s32 %v3322_v11 }
 0x370   : > { %v1352_v33 = vpop.xlane.xlu0 %1351  ;;  %v3439_v41 = vsel %vm2471_vm10, 2147483647, %v3431_v42 }
 0x371   : > { %v1353_v7 = vcvt.f32.s32 %v1352_v33  ;;  %v1649_v30 = vshra.s32 %v3439_v41, 16  ;;  %1477 = vst.msk [vmem:[#allocation2 + $0x38] sm:$0xff] %vm1469_vm11, %v1340_v55  ;;  %vm1501_vm1 = vcmp.eq.s32.totalorder %v3095_v61, %v1340_v55  ;;  %1636 = vmin.xlane.f32.xlu1 %v3436_v32  ;;  %v1403_v55 = vshll.u32 %v1402_v50, 16 }
 0x372   : > { %v3446_v46 = vsel %vm1501_vm1, 2147483647, %v3095_v61  ;;  %v1418_v33 = vcvt.f32.s32 %v3326_v26 }
 0x373   : > { %v1356_v27 = vadd.s32 %v1355_v25, %v1353_v7  ;;  %v3448_v16 = vcvt.s32.f32 %v1649_v30  ;;  %vm2473_vm12 = vcmp.gt.s32.totalorder %v3446_v46, 2147483647 }
 0x374   : > { %v1368_v24 = vpop.xlane.xlu1 %1367  ;;  %v3457_v61 = vsel %vm2473_vm12, 2147483647, %v3446_v46 }
 0x375   : > { %1478 = vst.msk [vmem:[#allocation2 + $0x40] sm:$0xff] %vm1469_vm11, %v1356_v27  ;;  %vm1502_vm13 = vcmp.eq.s32.totalorder %v3109_v63, %v1356_v27  ;;  %vm1503_vm14 = vcmp.eq.s32.totalorder %v3112_v20, %v1356_v27  ;;  %1652 = vmin.xlane.f32.xlu0 %v3448_v16  ;;  %v1369_v39 = vcvt.f32.s32 %v1368_v24  ;;  %v1665_v3 = vshra.s32 %v3457_v61, 16 }
 0x376   : > { %v3460_v40 = vsel %vm1502_vm13, 2147483647, %v3109_v63  ;;  %v3463_v14 = vsel %vm1503_vm14, 2147483647, %v3112_v20  ;;  %v1387_v20 = vshll.u32 %v1386_v21, 16  ;;  %v1419_v24 = vshll.u32 %v1418_v33, 16 }
 0x377   : > { %vm1678_vm15 = vcmp.lt.s32.totalorder %v3460_v40, %v3463_v14  ;;  %v1372_v59 = vadd.s32 %v1371_v57, %v1369_v39  ;;  %v3468_v17 = vcvt.s32.f32 %v1665_v3 }
 0x378   : > { %v3472_v9 = vsel %vm1678_vm15, %v3460_v40, %v3463_v14  ;;  %v1384_v63 = vpop.xlane.xlu0 %1383 }
 0x379   : > { %v1681_v34 = vshra.s32 %v3472_v9, 16  ;;  %1479 = vst.msk [vmem:[#allocation2 + $0x48] sm:$0xff] %vm1469_vm11, %v1372_v59  ;;  %vm1504_vm0 = vcmp.eq.s32.totalorder %v3129_v37, %v1372_v59  ;;  %vm1505_vm2 = vcmp.eq.s32.totalorder %v3134_v38, %v1372_v59  ;;  %v1385_v15 = vcvt.f32.s32 %v1384_v63  ;;  %1668 = vmin.xlane.f32.xlu1 %v3468_v17 }
 0x37a   : > { %v3481_v49 = vsel %vm1504_vm0, 2147483647, %v3129_v37  ;;  %v3484_v4 = vsel %vm1505_vm2, 2147483647, %v3134_v38 }
 0x37b   : > { %v3486_v11 = vcvt.s32.f32 %v1681_v34  ;;  %v1388_v12 = vadd.s32 %v1387_v20, %v1385_v15  ;;  %vm1694_vm3 = vcmp.lt.s32.totalorder %v3481_v49, %v3484_v4  ;;  %v1466_v20 = vcvt.f32.s32 %v3337_v58 }
 0x37c   : > { %v3494_v7 = vsel %vm1694_vm3, %v3481_v49, %v3484_v4 }
 0x37d   : > { %v1400_v25 = vpop.xlane.xlu1 %1399  ;;  %1684 = vmin.xlane.f32.xlu0 %v3486_v11  ;;  %1480 = vst.msk [vmem:[#allocation2 + $0x50] sm:$0xff] %vm1469_vm11, %v1388_v12  ;;  %vm1506_vm4 = vcmp.eq.s32.totalorder %v3149_v10, %v1388_v12  ;;  %vm1507_vm5 = vcmp.eq.s32.totalorder %v3153_v36, %v1388_v12  ;;  %v1697_v38 = vshra.s32 %v3494_v7, 16 }
 0x37e   : > { %v1401_v37 = vcvt.f32.s32 %v1400_v25  ;;  %v3501_v30 = vsel %vm1506_vm4, 2147483647, %v3149_v10  ;;  %v3504_v26 = vsel %vm1507_vm5, 2147483647, %v3153_v36  ;;  %v1434_v36 = vcvt.f32.s32 %v3333_v47 }
 0x37f   : > { %v3506_v21 = vcvt.s32.f32 %v1697_v38  ;;  %vm1710_vm6 = vcmp.lt.s32.totalorder %v3501_v30, %v3504_v26 }
 0x380   : > { %v1404_v27 = vadd.s32 %v1403_v55, %v1401_v37  ;;  %v1416_v57 = vpop.xlane.xlu0 %1415  ;;  %v3512_v3 = vsel %vm1710_vm6, %v3501_v30, %v3504_v26  ;;  %v1435_v55 = vshll.u32 %v1434_v36, 16  ;;  %v1467_v37 = vshll.u32 %v1466_v20, 16 }
 0x381   : > { %v1417_v39 = vcvt.f32.s32 %v1416_v57  ;;  %1700 = vmin.xlane.f32.xlu1 %v3506_v21  ;;  %v1713_v10 = vshra.s32 %v3512_v3, 16 }
 0x382   : > { %1481 = vst.msk [vmem:[#allocation2 + $0x58] sm:$0xff] %vm1469_vm11, %v1404_v27  ;;  %vm1508_vm7 = vcmp.eq.s32.totalorder %v3169_v8, %v1404_v27  ;;  %vm1509_vm8 = vcmp.eq.s32.totalorder %v3172_v54, %v1404_v27 }
 0x383   : > { %v3521_v59 = vsel %vm1508_vm7, 2147483647, %v3169_v8  ;;  %v3524_v50 = vsel %vm1509_vm8, 2147483647, %v3172_v54  ;;  %v1420_v63 = vadd.s32 %v1419_v24, %v1417_v39  ;;  %v3526_v34 = vcvt.s32.f32 %v1713_v10 }
 0x384   : > { %vm1726_vm9 = vcmp.lt.s32.totalorder %v3521_v59, %v3524_v50  ;;  %v1450_v54 = vcvt.f32.s32 %v3339_v6 }
 0x385   : > { %1482 = vst.msk [vmem:[#allocation2 + $0x60] sm:$0xff] %vm1469_vm11, %v1420_v63  ;;  %vm1510_vm10 = vcmp.eq.s32.totalorder %v3190_v44, %v1420_v63  ;;  %vm1511_vm1 = vcmp.eq.s32.totalorder %v3193_v31, %v1420_v63  ;;  %v3536_v8 = vsel %vm1726_vm9, %v3521_v59, %v3524_v50  ;;  %1716 = vmin.xlane.f32.xlu0 %v3526_v34 }
 0x386   : > { %v3540_v47 = vsel %vm1510_vm10, 2147483647, %v3190_v44  ;;  %v3543_v15 = vsel %vm1511_vm1, 2147483647, %v3193_v31  ;;  %v1432_v12 = vpop.xlane.xlu1 %1431  ;;  %v1729_v58 = vshra.s32 %v3536_v8, 16  ;;  %v1451_v38 = vshll.u32 %v1450_v54, 16 }
 0x387   : > { %v1433_v33 = vcvt.f32.s32 %v1432_v12  ;;  %vm1742_vm12 = vcmp.lt.s32.totalorder %v3540_v47, %v3543_v15 }
 0x388   : > { %v3549_v25 = vcvt.s32.f32 %v1729_v58  ;;  %v3553_v6 = vsel %vm1742_vm12, %v3540_v47, %v3543_v15 }
 0x389   : > { %v1436_v44 = vadd.s32 %v1435_v55, %v1433_v33  ;;  %v1745_v31 = vshra.s32 %v3553_v6, 16  ;;  %v1448_v57 = vpop.xlane.xlu0 %1447 }
 0x38a   : > { %v1464_v27 = vpop.xlane.xlu1 %1463  ;;  %1732 = vmin.xlane.f32.xlu1 %v3549_v25  ;;  %v1449_v39 = vcvt.f32.s32 %v1448_v57 }
 0x38b   : > { %1483 = vst.msk [vmem:[#allocation2 + $0x68] sm:$0xff] %vm1469_vm11, %v1436_v44  ;;  %vm1512_vm13 = vcmp.eq.s32.totalorder %v3211_v45, %v1436_v44  ;;  %vm1513_vm14 = vcmp.eq.s32.totalorder %v3214_v43, %v1436_v44  ;;  %v1465_v24 = vcvt.f32.s32 %v1464_v27  ;;  %v3566_v63 = vcvt.s32.f32 %v1745_v31 }
 0x38c   : > { %v3561_v10 = vsel %vm1512_vm13, 2147483647, %v3211_v45  ;;  %v3564_v36 = vsel %vm1513_vm14, 2147483647, %v3214_v43  ;;  %v1452_v54 = vadd.s32 %v1451_v38, %v1449_v39  ;;  %v4010_v45 = vld [vmem:[#allocation3_spill] sm:$0xff]  ;;  %v4011_v43 = vld [vmem:[#allocation4_spill] sm:$0xff] }
 0x38d   : > { %v1468_v20 = vadd.s32 %v1467_v37, %v1465_v24  ;;  %vm1758_vm15 = vcmp.lt.s32.totalorder %v3561_v10, %v3564_v36  ;;  %1748 = vmin.xlane.f32.xlu0 %v3566_v63  ;;  %v1552_v39 = vand.u32 65535, %v3355_v52 }
 0x38e   : > { %v3573_v12 = vsel %vm1758_vm15, %v3561_v10, %v3564_v36  ;;  %1484 = vst.msk [vmem:[#allocation2 + $0x70] sm:$0xff] %vm1469_vm11, %v1452_v54  ;;  %vm1514_vm3 = vcmp.eq.s32.totalorder %v4010_v45, %v1452_v54  ;;  %vm1515_vm4 = vcmp.eq.s32.totalorder %v4011_v43, %v1452_v54 }
 0x38f   : > { %1485 = vst.msk [vmem:[#allocation2 + $0x78] sm:$0xff] %vm1469_vm11, %v1468_v20  ;;  %vm1516_vm0 = vcmp.eq.s32.totalorder %v3229_v60, %v1468_v20  ;;  %vm1517_vm2 = vcmp.eq.s32.totalorder %v3232_v23, %v1468_v20  ;;  %v3588_v33 = vsel %vm1514_vm3, 2147483647, %v4010_v45  ;;  %v3591_v44 = vsel %vm1515_vm4, 2147483647, %v4011_v43 }
 0x390   : > { %v3582_v58 = vsel %vm1516_vm0, 2147483647, %v3229_v60  ;;  %v3585_v55 = vsel %vm1517_vm2, 2147483647, %v3232_v23  ;;  %v1761_v31 = vshra.s32 %v3573_v12, 16  ;;  %vm1774_vm5 = vcmp.lt.s32.totalorder %v3588_v33, %v3591_v44 }
 0x391   : > { %4012 = vst [vmem:[#allocation3_spill] sm:$0xff] %v3585_v55  ;;  %vm1790_vm11 = vcmp.lt.s32.totalorder %v3582_v58, %v3585_v55  ;;  %v3607_v38 = vsel %vm1774_vm5, %v3588_v33, %v3591_v44  ;;  %v1554_v54 = vcvt.s32.f32 %v1552_v39  ;;  %v1568_v43 = vand.u32 65535, %v3369_v2 }
 0x392   : > { %v3598_v37 = vsel %vm1790_vm11, %v3582_v58, %v3585_v55  ;;  %v3602_v60 = vcvt.s32.f32 %v1761_v31  ;;  %v1777_v27 = vshra.s32 %v3607_v38, 16 }
 0x393   : > { %v1793_v23 = vshra.s32 %v3598_v37, 16 }
 0x394   : > { %1764 = vmin.xlane.f32.xlu1 %v3602_v60  ;;  %v3613_v24 = vcvt.s32.f32 %v1777_v27  ;;  %v1584_v27 = vand.u32 65535, %v3383_v0 }
 0x395   : > { %v3611_v57 = vcvt.s32.f32 %v1793_v23  ;;  %v1570_v23 = vcvt.s32.f32 %v1568_v43 }
 0x396   : > { %1780 = vmin.xlane.f32.xlu0 %v3613_v24  ;;  %v1586_v39 = vcvt.s32.f32 %v1584_v27 }
 0x398   : > { %1796 = vmin.xlane.f32.xlu1 %v3611_v57 }
 0x3e4   : > { %v3618_v20 = vpop.xlane.xlu0 %1556 }
 0x3e5   : > { %vm1558_vm6 = vcmp.eq.f32.partialorder %v3360_v5, %v3618_v20  ;;  %v1600_v5 = vand.u32 65535, %v3400_v29 }
 0x3e6   : > { %v1559_v45 = vsel %vm1558_vm6, %v1554_v54, inf  ;;  %v1616_v54 = vand.u32 65535, %v3411_v13  ;;  %v1648_v13 = vand.u32 65535, %v3439_v41  ;;  %v1680_v41 = vand.u32 65535, %v3472_v9 }
 0x3e7   : > { %1560 = vmin.xlane.f32.xlu0 %v1559_v45  ;;  %v1602_v0 = vcvt.s32.f32 %v1600_v5  ;;  %vm1806_vm6 = vcmask 23568  }
 0x3e8   : > { %v1618_v43 = vcvt.s32.f32 %v1616_v54  ;;  %v1650_v5 = vcvt.s32.f32 %v1648_v13 }
 0x3ea   : > { %v3623_v31 = vpop.xlane.xlu1 %1572 }
 0x3eb   : > { %vm1574_vm7 = vcmp.eq.f32.partialorder %v3378_v56, %v3623_v31 }
 0x3ec   : > { %v1575_v55 = vsel %vm1574_vm7, %v1570_v23, inf }
 0x3ed   : > { %1576 = vmin.xlane.f32.xlu1 %v1575_v55 }
 0x3ee   : > { %v3628_v52 = vpop.xlane.xlu0 %1588 }
 0x3ef   : > { %vm1590_vm8 = vcmp.eq.f32.partialorder %v3392_v35, %v3628_v52  ;;  %v1632_v35 = vand.u32 65535, %v3428_v48 }
 0x3f0   : > { %v1591_v2 = vsel %vm1590_vm8, %v1586_v39, inf }
 0x3f1   : > { %1592 = vmin.xlane.f32.xlu0 %v1591_v2  ;;  %v1634_v27 = vcvt.s32.f32 %v1632_v35  ;;  %v1712_v35 = vand.u32 65535, %v3512_v3  ;;  %v1744_v3 = vand.u32 65535, %v3553_v6 }
 0x3f2   : > { %v3634_v45 = vpop.xlane.xlu1 %1604 }
 0x3f3   : > { %vm1606_vm9 = vcmp.eq.f32.partialorder %v3408_v28, %v3634_v45  ;;  %v1714_v13 = vcvt.s32.f32 %v1712_v35  ;;  %v1579_v35 = vcvt.f32.s32 %v3623_v31 }
 0x3f4   : > { %v1607_v56 = vsel %vm1606_vm9, %v1602_v0, inf }
 0x3f5   : > { %1608 = vmin.xlane.f32.xlu1 %v1607_v56  ;;  %v1682_v56 = vcvt.s32.f32 %v1680_v41 }
 0x3f6   : > { %v3638_v55 = vpop.xlane.xlu0 %1620 }
 0x3f7   : > { %vm1622_vm10 = vcmp.eq.f32.partialorder %v3420_v19, %v3638_v55  ;;  %v1664_v19 = vand.u32 65535, %v3457_v61 }
 0x3f8   : > { %v1623_v29 = vsel %vm1622_vm10, %v1618_v43, inf }
 0x3f9   : > { %1624 = vmin.xlane.f32.xlu0 %v1623_v29  ;;  %v1666_v54 = vcvt.s32.f32 %v1664_v19  ;;  %v1746_v19 = vcvt.s32.f32 %v1744_v3 }
 0x3fa   : > { %v3644_v23 = vpop.xlane.xlu1 %1636 }
 0x3fb   : > { %vm1638_vm1 = vcmp.eq.f32.partialorder %v3436_v32, %v3644_v23 }
 0x3fc   : > { %v1639_v28 = vsel %vm1638_vm1, %v1634_v27, inf  ;;  %v1728_v27 = vand.u32 65535, %v3536_v8 }
 0x3fd   : > { %1640 = vmin.xlane.f32.xlu1 %v1639_v28 }
 0x3fe   : > { %v3648_v39 = vpop.xlane.xlu0 %1652  ;;  %v1730_v28 = vcvt.s32.f32 %v1728_v27  ;;  %v1580_v27 = vshll.u32 %v1579_v35, 16 }
 0x3ff   : > { %vm1654_vm12 = vcmp.eq.f32.partialorder %v3448_v16, %v3648_v39  ;;  %v1696_v16 = vand.u32 65535, %v3494_v7 }
 0x400   : > { %v1655_v48 = vsel %vm1654_vm12, %v1650_v5, inf }
 0x401   : > { %1656 = vmin.xlane.f32.xlu0 %v1655_v48  ;;  %v1698_v9 = vcvt.s32.f32 %v1696_v16  ;;  %v1776_v48 = vand.u32 65535, %v3607_v38 }
 0x402   : > { %v3654_v2 = vpop.xlane.xlu1 %1668 }
 0x403   : > { %vm1670_vm13 = vcmp.eq.f32.partialorder %v3468_v17, %v3654_v2 }
 0x404   : > { %v1671_v32 = vsel %vm1670_vm13, %v1666_v54, inf  ;;  %v1792_v54 = vand.u32 65535, %v3598_v37  ;;  %v1563_v37 = vcvt.f32.s32 %v3618_v20 }
 0x405   : > { %1672 = vmin.xlane.f32.xlu1 %v1671_v32 }
 0x406   : > { %v3658_v0 = vpop.xlane.xlu0 %1684 }
 0x407   : > { %vm1686_vm14 = vcmp.eq.f32.partialorder %v3486_v11, %v3658_v0 }
 0x408   : > { %v1687_v61 = vsel %vm1686_vm14, %v1682_v56, inf  ;;  %v1778_v56 = vcvt.s32.f32 %v1776_v48 }
 0x409   : > { %1688 = vmin.xlane.f32.xlu0 %v1687_v61  ;;  %v1564_v61 = vshll.u32 %v1563_v37, 16 }
 0x40a   : > { %v3663_v43 = vpop.xlane.xlu1 %1700 }
 0x40b   : > { %vm1702_vm15 = vcmp.eq.f32.partialorder %v3506_v21, %v3663_v43 }
 0x40c   : > { %v1703_v17 = vsel %vm1702_vm15, %v1698_v9, inf }
 0x40d   : > { %1704 = vmin.xlane.f32.xlu1 %v1703_v17 }
 0x40e   : > { %v3668_v29 = vpop.xlane.xlu0 %1716 }
 0x40f   : > { %vm1718_vm0 = vcmp.eq.f32.partialorder %v3526_v34, %v3668_v29  ;;  %v1760_v34 = vand.u32 65535, %v3573_v12  ;;  %v1794_v12 = vcvt.s32.f32 %v1792_v54 }
 0x410   : > { %v1719_v11 = vsel %vm1718_vm0, %v1714_v13, inf }
 0x411   : > { %1720 = vmin.xlane.f32.xlu0 %v1719_v11  ;;  %v1762_v6 = vcvt.s32.f32 %v1760_v34 }
 0x413   : > { %v3673_v7 = vpop.xlane.xlu1 %1732 }
 0x414   : > { %vm1734_vm2 = vcmp.eq.f32.partialorder %v3549_v25, %v3673_v7 }
 0x415   : > { %v1735_v21 = vsel %vm1734_vm2, %v1730_v28, inf }
 0x416   : > { %1736 = vmin.xlane.f32.xlu1 %v1735_v21  ;;  %v3678_v5 = vpop.xlane.xlu0 %1748 }
 0x417   : > { %vm1750_vm3 = vcmp.eq.f32.partialorder %v3566_v63, %v3678_v5 }
 0x418   : > { %v1751_v8 = vsel %vm1750_vm3, %v1746_v19, inf }
 0x419   : > { %1752 = vmin.xlane.f32.xlu0 %v1751_v8 }
 0x41d   : > { %v3684_v41 = vpop.xlane.xlu1 %1764 }
 0x41e   : > { %vm1766_vm4 = vcmp.eq.f32.partialorder %v3602_v60, %v3684_v41 }
 0x41f   : > { %v1767_v25 = vsel %vm1766_vm4, %v1762_v6, inf  ;;  %v3689_v32 = vpop.xlane.xlu0 %1780  ;;  %v1627_v6 = vcvt.f32.s32 %v3638_v55 }
 0x420   : > { %1768 = vmin.xlane.f32.xlu1 %v1767_v25  ;;  %vm1782_vm11 = vcmp.eq.f32.partialorder %v3613_v24, %v3689_v32  ;;  %v1595_v24 = vcvt.f32.s32 %v3628_v52  ;;  %v1611_v52 = vcvt.f32.s32 %v3634_v45 }
 0x421   : > { %v3691_v63 = vpop.xlane.xlu1 %1796  ;;  %v1783_v38 = vsel %vm1782_vm11, %v1778_v56, inf  ;;  %v1628_v55 = vshll.u32 %v1627_v6, 16 }
 0x422   : > { %vm1798_vm5 = vcmp.eq.f32.partialorder %v3611_v57, %v3691_v63  ;;  %1784 = vmin.xlane.f32.xlu0 %v1783_v38  ;;  %v1596_v21 = vshll.u32 %v1595_v24, 16  ;;  %v1612_v56 = vshll.u32 %v1611_v52, 16  ;;  %v1643_v38 = vcvt.f32.s32 %v3644_v23 }
 0x423   : > { %v1799_v16 = vsel %vm1798_vm5, %v1794_v12, inf  ;;  %v1659_v24 = vcvt.f32.s32 %v3648_v39 }
 0x424   : > { %1800 = vmin.xlane.f32.xlu1 %v1799_v16  ;;  %v1644_v23 = vshll.u32 %v1643_v38, 16 }
 0x470   : > { %v1561_v60 = vpop.xlane.xlu0 %1560 }
 0x471   : > { %v1562_v9 = vcvt.f32.s32 %v1561_v60 }
 0x473   : > { %v1565_v17 = vadd.s32 %v1564_v61, %v1562_v9 }
 0x475   : > { %1807 = vst.msk [vmem:[#allocation2] sm:$0xff] %vm1806_vm6, %v1565_v17  ;;  %vm1824_vm7 = vcmp.eq.s32.totalorder %v3351_v53, %v1565_v17 }
 0x476   : > { %v1577_v57 = vpop.xlane.xlu1 %1576  ;;  %v1856_v13 = vsel %vm1824_vm7, 2147483647, %v3351_v53 }
 0x477   : > { %v1578_v11 = vcvt.f32.s32 %v1577_v57  ;;  %vm2475_vm8 = vcmp.gt.s32.totalorder %v1856_v13, 2147483647 }
 0x478   : > { %v3703_v20 = vsel %vm2475_vm8, 2147483647, %v1856_v13 }
 0x479   : > { %v1581_v28 = vadd.s32 %v1580_v27, %v1578_v11  ;;  %v1890_v3 = vshra.s32 %v3703_v20, 16 }
 0x47a   : > { %v1593_v31 = vpop.xlane.xlu0 %1592 }
 0x47b   : > { %1808 = vst.msk [vmem:[#allocation2 + $0x8] sm:$0xff] %vm1806_vm6, %v1581_v28  ;;  %vm1826_vm9 = vcmp.eq.s32.totalorder %v3364_v62, %v1581_v28  ;;  %v1594_v19 = vcvt.f32.s32 %v1593_v31  ;;  %v3708_v8 = vcvt.s32.f32 %v1890_v3 }
 0x47c   : > { %v1858_v53 = vsel %vm1826_vm9, 2147483647, %v3364_v62 }
 0x47d   : > { %v1597_v34 = vadd.s32 %v1596_v21, %v1594_v19  ;;  %1893 = vmin.xlane.f32.xlu0 %v3708_v8  ;;  %vm2477_vm10 = vcmp.gt.s32.totalorder %v1858_v53, 2147483647  ;;  %v1660_v19 = vshll.u32 %v1659_v24, 16  ;;  %v1723_v24 = vcvt.f32.s32 %v3668_v29 }
 0x47e   : > { %v3713_v48 = vsel %vm2477_vm10, 2147483647, %v1858_v53  ;;  %v1609_v54 = vpop.xlane.xlu1 %1608 }
 0x47f   : > { %1809 = vst.msk [vmem:[#allocation2 + $0x10] sm:$0xff] %vm1806_vm6, %v1597_v34  ;;  %vm1828_vm1 = vcmp.eq.s32.totalorder %v3376_v51, %v1597_v34  ;;  %v1906_v25 = vshra.s32 %v3713_v48, 16  ;;  %v1610_v12 = vcvt.f32.s32 %v1609_v54  ;;  %v1691_v54 = vcvt.f32.s32 %v3658_v0 }
 0x480   : > { %v1860_v45 = vsel %vm1828_vm1, 2147483647, %v3376_v51 }
 0x481   : > { %v3720_v62 = vcvt.s32.f32 %v1906_v25  ;;  %vm2479_vm12 = vcmp.gt.s32.totalorder %v1860_v45, 2147483647  ;;  %v1613_v16 = vadd.s32 %v1612_v56, %v1610_v12 }
 0x482   : > { %v1625_v37 = vpop.xlane.xlu0 %1624  ;;  %v3723_v60 = vsel %vm2479_vm12, 2147483647, %v1860_v45 }
 0x483   : > { %v1626_v61 = vcvt.f32.s32 %v1625_v37  ;;  %1909 = vmin.xlane.f32.xlu1 %v3720_v62  ;;  %v1922_v9 = vshra.s32 %v3723_v60, 16  ;;  %1810 = vst.msk [vmem:[#allocation2 + $0x18] sm:$0xff] %vm1806_vm6, %v1613_v16  ;;  %vm1830_vm13 = vcmp.eq.s32.totalorder %v3390_v1, %v1613_v16 }
 0x484   : > { %v1862_v17 = vsel %vm1830_vm13, 2147483647, %v3390_v1  ;;  %v1675_v1 = vcvt.f32.s32 %v3654_v2 }
 0x485   : > { %v1629_v51 = vadd.s32 %v1628_v55, %v1626_v61  ;;  %v3729_v35 = vcvt.s32.f32 %v1922_v9  ;;  %vm2481_vm14 = vcmp.gt.s32.totalorder %v1862_v17, 2147483647  ;;  %v1692_v61 = vshll.u32 %v1691_v54, 16 }
 0x486   : > { %v1641_v57 = vpop.xlane.xlu1 %1640  ;;  %v3736_v13 = vsel %vm2481_vm14, 2147483647, %v1862_v17  ;;  %v1676_v6 = vshll.u32 %v1675_v1, 16 }
 0x487   : > { %1811 = vst.msk [vmem:[#allocation2 + $0x20] sm:$0xff] %vm1806_vm6, %v1629_v51  ;;  %vm1832_vm15 = vcmp.eq.s32.totalorder %v3403_v18, %v1629_v51  ;;  %1925 = vmin.xlane.f32.xlu0 %v3729_v35  ;;  %v1642_v27 = vcvt.f32.s32 %v1641_v57  ;;  %v1938_v11 = vshra.s32 %v3736_v13, 16 }
 0x488   : > { %v1864_v28 = vsel %vm1832_vm15, 2147483647, %v3403_v18 }
 0x489   : > { %vm2483_vm0 = vcmp.gt.s32.totalorder %v1864_v28, 2147483647  ;;  %v1645_v3 = vadd.s32 %v1644_v23, %v1642_v27  ;;  %v3741_v39 = vcvt.s32.f32 %v1938_v11 }
 0x48a   : > { %v1657_v21 = vpop.xlane.xlu0 %1656  ;;  %v3743_v31 = vsel %vm2483_vm0, 2147483647, %v1864_v28 }
 0x48b   : > { %v1658_v52 = vcvt.f32.s32 %v1657_v21  ;;  %v1954_v53 = vshra.s32 %v3743_v31, 16  ;;  %1812 = vst.msk [vmem:[#allocation2 + $0x28] sm:$0xff] %vm1806_vm6, %v1645_v3  ;;  %vm1834_vm2 = vcmp.eq.s32.totalorder %v3418_v22, %v1645_v3  ;;  %1941 = vmin.xlane.f32.xlu1 %v3741_v39 }
 0x48c   : > { %v1866_v2 = vsel %vm1834_vm2, 2147483647, %v3418_v22  ;;  %v1707_v22 = vcvt.f32.s32 %v3663_v43 }
 0x48d   : > { %v1661_v18 = vadd.s32 %v1660_v19, %v1658_v52  ;;  %v3749_v34 = vcvt.s32.f32 %v1954_v53  ;;  %vm2485_vm3 = vcmp.gt.s32.totalorder %v1866_v2, 2147483647  ;;  %v1739_v19 = vcvt.f32.s32 %v3673_v7 }
 0x48e   : > { %v1673_v25 = vpop.xlane.xlu1 %1672  ;;  %v3756_v56 = vsel %vm2485_vm3, 2147483647, %v1866_v2  ;;  %v1708_v23 = vshll.u32 %v1707_v22, 16 }
 0x48f   : > { %1813 = vst.msk [vmem:[#allocation2 + $0x30] sm:$0xff] %vm1806_vm6, %v1661_v18  ;;  %vm1836_vm4 = vcmp.eq.s32.totalorder %v3431_v42, %v1661_v18  ;;  %1957 = vmin.xlane.f32.xlu0 %v3749_v34  ;;  %v1674_v12 = vcvt.f32.s32 %v1673_v25  ;;  %v1970_v45 = vshra.s32 %v3756_v56, 16  ;;  %v1724_v18 = vshll.u32 %v1723_v24, 16 }
 0x490   : > { %v1868_v38 = vsel %vm1836_vm4, 2147483647, %v3431_v42  ;;  %v1740_v54 = vshll.u32 %v1739_v19, 16  ;;  %v1755_v25 = vcvt.f32.s32 %v3678_v5  ;;  %v1771_v24 = vcvt.f32.s32 %v3684_v41 }
 0x491   : > { %vm2487_vm11 = vcmp.gt.s32.totalorder %v1868_v38, 2147483647  ;;  %v1677_v16 = vadd.s32 %v1676_v6, %v1674_v12  ;;  %v3761_v0 = vcvt.s32.f32 %v1970_v45 }
 0x492   : > { %v1689_v37 = vpop.xlane.xlu0 %1688  ;;  %v3763_v55 = vsel %vm2487_vm11, 2147483647, %v1868_v38 }
 0x493   : > { %v1690_v9 = vcvt.f32.s32 %v1689_v37  ;;  %v1986_v51 = vshra.s32 %v3763_v55, 16  ;;  %1814 = vst.msk [vmem:[#allocation2 + $0x38] sm:$0xff] %vm1806_vm6, %v1677_v16  ;;  %vm1838_vm5 = vcmp.eq.s32.totalorder %v3446_v46, %v1677_v16  ;;  %1973 = vmin.xlane.f32.xlu1 %v3761_v0  ;;  %v1756_v37 = vshll.u32 %v1755_v25, 16 }
 0x494   : > { %v1870_v43 = vsel %vm1838_vm5, 2147483647, %v3446_v46 }
 0x495   : > { %v1693_v42 = vadd.s32 %v1692_v61, %v1690_v9  ;;  %v3769_v17 = vcvt.s32.f32 %v1986_v51  ;;  %vm2489_vm7 = vcmp.gt.s32.totalorder %v1870_v43, 2147483647 }
 0x496   : > { %v1705_v57 = vpop.xlane.xlu1 %1704  ;;  %v3777_v27 = vsel %vm2489_vm7, 2147483647, %v1870_v43 }
 0x497   : > { %1815 = vst.msk [vmem:[#allocation2 + $0x40] sm:$0xff] %vm1806_vm6, %v1693_v42  ;;  %vm1839_vm8 = vcmp.eq.s32.totalorder %v3460_v40, %v1693_v42  ;;  %vm1840_vm9 = vcmp.eq.s32.totalorder %v3463_v14, %v1693_v42  ;;  %1989 = vmin.xlane.f32.xlu0 %v3769_v17  ;;  %v1706_v11 = vcvt.f32.s32 %v1705_v57  ;;  %v2002_v28 = vshra.s32 %v3777_v27, 16 }
 0x498   : > { %v1871_v46 = vsel %vm1839_vm8, 2147483647, %v3460_v40  ;;  %v1872_v1 = vsel %vm1840_vm9, 2147483647, %v3463_v14 }
 0x499   : > { %vm2015_vm10 = vcmp.lt.s32.totalorder %v1871_v46, %v1872_v1  ;;  %v1709_v29 = vadd.s32 %v1708_v23, %v1706_v11  ;;  %v3782_v3 = vcvt.s32.f32 %v2002_v28  ;;  %v1787_v28 = vcvt.f32.s32 %v3689_v32 }
 0x49a   : > { %v3784_v21 = vsel %vm2015_vm10, %v1871_v46, %v1872_v1  ;;  %v1721_v52 = vpop.xlane.xlu0 %1720  ;;  %v1772_v1 = vshll.u32 %v1771_v24, 16 }
 0x49b   : > { %v2018_v53 = vshra.s32 %v3784_v21, 16  ;;  %1816 = vst.msk [vmem:[#allocation2 + $0x48] sm:$0xff] %vm1806_vm6, %v1709_v29  ;;  %vm1841_vm1 = vcmp.eq.s32.totalorder %v3481_v49, %v1709_v29  ;;  %vm1842_vm12 = vcmp.eq.s32.totalorder %v3484_v4, %v1709_v29  ;;  %v1722_v40 = vcvt.f32.s32 %v1721_v52  ;;  %2005 = vmin.xlane.f32.xlu1 %v3782_v3 }
 0x49c   : > { %v1873_v2 = vsel %vm1841_vm1, 2147483647, %v3481_v49  ;;  %v1874_v6 = vsel %vm1842_vm12, 2147483647, %v3484_v4  ;;  %v1803_v29 = vcvt.f32.s32 %v3691_v63 }
 0x49d   : > { %v3792_v14 = vcvt.s32.f32 %v2018_v53  ;;  %v1725_v7 = vadd.s32 %v1724_v18, %v1722_v40  ;;  %vm2031_vm13 = vcmp.lt.s32.totalorder %v1873_v2, %v1874_v6  ;;  %v1788_v40 = vshll.u32 %v1787_v28, 16 }
 0x49e   : > { %v3798_v45 = vsel %vm2031_vm13, %v1873_v2, %v1874_v6  ;;  %v1804_v6 = vshll.u32 %v1803_v29, 16  ;;  %v1921_v28 = vand.u32 65535, %v3723_v60  ;;  %v1953_v29 = vand.u32 65535, %v3743_v31 }
 0x49f   : > { %v1737_v12 = vpop.xlane.xlu1 %1736  ;;  %2021 = vmin.xlane.f32.xlu0 %v3792_v14  ;;  %1817 = vst.msk [vmem:[#allocation2 + $0x50] sm:$0xff] %vm1806_vm6, %v1725_v7  ;;  %vm1843_vm14 = vcmp.eq.s32.totalorder %v3501_v30, %v1725_v7  ;;  %vm1844_vm15 = vcmp.eq.s32.totalorder %v3504_v26, %v1725_v7  ;;  %v2034_v49 = vshra.s32 %v3798_v45, 16  ;;  %v1985_v31 = vand.u32 65535, %v3763_v55 }
 0x4a0   : > { %v1738_v38 = vcvt.f32.s32 %v1737_v12  ;;  %v1875_v4 = vsel %vm1843_vm14, 2147483647, %v3501_v30  ;;  %v1876_v22 = vsel %vm1844_vm15, 2147483647, %v3504_v26  ;;  %v2017_v55 = vand.u32 65535, %v3784_v21 }
 0x4a1   : > { %v3806_v5 = vcvt.s32.f32 %v2034_v49  ;;  %vm2047_vm0 = vcmp.lt.s32.totalorder %v1875_v4, %v1876_v22  ;;  %v4013_v49 = vld [vmem:[#allocation3_spill] sm:$0xff] }
 0x4a2   : > { %v1741_v16 = vadd.s32 %v1740_v54, %v1738_v38  ;;  %v1753_v61 = vpop.xlane.xlu0 %1752  ;;  %v3808_v9 = vsel %vm2047_vm0, %v1875_v4, %v1876_v22 }
 0x4a3   : > { %v1754_v51 = vcvt.f32.s32 %v1753_v61  ;;  %2037 = vmin.xlane.f32.xlu1 %v3806_v5  ;;  %v2050_v30 = vshra.s32 %v3808_v9, 16 }
 0x4a4   : > { %1818 = vst.msk [vmem:[#allocation2 + $0x58] sm:$0xff] %vm1806_vm6, %v1741_v16  ;;  %vm1845_vm2 = vcmp.eq.s32.totalorder %v3521_v59, %v1741_v16  ;;  %vm1846_vm3 = vcmp.eq.s32.totalorder %v3524_v50, %v1741_v16 }
 0x4a5   : > { %v1877_v26 = vsel %vm1845_vm2, 2147483647, %v3521_v59  ;;  %v1878_v42 = vsel %vm1846_vm3, 2147483647, %v3524_v50  ;;  %v1757_v43 = vadd.s32 %v1756_v37, %v1754_v51  ;;  %v3817_v23 = vcvt.s32.f32 %v2050_v30 }
 0x4a6   : > { %vm2063_vm4 = vcmp.lt.s32.totalorder %v1877_v26, %v1878_v42 }
 0x4a7   : > { %v3820_v57 = vsel %vm2063_vm4, %v1877_v26, %v1878_v42  ;;  %1819 = vst.msk [vmem:[#allocation2 + $0x60] sm:$0xff] %vm1806_vm6, %v1757_v43  ;;  %vm1847_vm11 = vcmp.eq.s32.totalorder %v3540_v47, %v1757_v43  ;;  %vm1848_vm5 = vcmp.eq.s32.totalorder %v3543_v15, %v1757_v43  ;;  %2053 = vmin.xlane.f32.xlu0 %v3817_v23 }
 0x4a8   : > { %v2066_v59 = vshra.s32 %v3820_v57, 16  ;;  %v1879_v50 = vsel %vm1847_vm11, 2147483647, %v3540_v47  ;;  %v1880_v11 = vsel %vm1848_vm5, 2147483647, %v3543_v15 }
 0x4a9   : > { %v1769_v46 = vpop.xlane.xlu1 %1768  ;;  %vm2079_vm7 = vcmp.lt.s32.totalorder %v1879_v50, %v1880_v11 }
 0x4aa   : > { %v3830_v41 = vcvt.s32.f32 %v2066_v59  ;;  %v1770_v19 = vcvt.f32.s32 %v1769_v46  ;;  %v3833_v52 = vsel %vm2079_vm7, %v1879_v50, %v1880_v11  ;;  %v1905_v59 = vand.u32 65535, %v3713_v48 }
 0x4ab   : > { %v2082_v53 = vshra.s32 %v3833_v52, 16  ;;  %v1785_v47 = vpop.xlane.xlu0 %1784 }
 0x4ac   : > { %2069 = vmin.xlane.f32.xlu1 %v3830_v41  ;;  %v1773_v18 = vadd.s32 %v1772_v1, %v1770_v19  ;;  %v1786_v2 = vcvt.f32.s32 %v1785_v47  ;;  %v1907_v11 = vcvt.s32.f32 %v1905_v59  ;;  %v1923_v1 = vcvt.s32.f32 %v1921_v28 }
 0x4ad   : > { %v1801_v15 = vpop.xlane.xlu1 %1800  ;;  %v3837_v32 = vcvt.s32.f32 %v2082_v53 }
 0x4ae   : > { %1820 = vst.msk [vmem:[#allocation2 + $0x68] sm:$0xff] %vm1806_vm6, %v1773_v18  ;;  %vm1849_vm8 = vcmp.eq.s32.totalorder %v3561_v10, %v1773_v18  ;;  %vm1850_vm9 = vcmp.eq.s32.totalorder %v3564_v36, %v1773_v18  ;;  %v1802_v63 = vcvt.f32.s32 %v1801_v15  ;;  %v1789_v7 = vadd.s32 %v1788_v40, %v1786_v2 }
 0x4af   : > { %2085 = vmin.xlane.f32.xlu0 %v3837_v32  ;;  %v1881_v54 = vsel %vm1849_vm8, 2147483647, %v3561_v10  ;;  %v1882_v25 = vsel %vm1850_vm9, 2147483647, %v3564_v36  ;;  %v1955_v18 = vcvt.s32.f32 %v1953_v29  ;;  %v1987_v2 = vcvt.s32.f32 %v1985_v31 }
 0x4b0   : > { %v1805_v12 = vadd.s32 %v1804_v6, %v1802_v63  ;;  %vm2095_vm10 = vcmp.lt.s32.totalorder %v1881_v54, %v1882_v25  ;;  %1821 = vst.msk [vmem:[#allocation2 + $0x70] sm:$0xff] %vm1806_vm6, %v1789_v7  ;;  %vm1851_vm1 = vcmp.eq.s32.totalorder %v3588_v33, %v1789_v7  ;;  %vm1852_vm12 = vcmp.eq.s32.totalorder %v3591_v44, %v1789_v7 }
 0x4b1   : > { %v3848_v38 = vsel %vm2095_vm10, %v1881_v54, %v1882_v25  ;;  %v1883_v36 = vsel %vm1851_vm1, 2147483647, %v3588_v33  ;;  %v1884_v16 = vsel %vm1852_vm12, 2147483647, %v3591_v44  ;;  %v1889_v44 = vand.u32 65535, %v3703_v20 }
 0x4b2   : > { %1822 = vst.msk [vmem:[#allocation2 + $0x78] sm:$0xff] %vm1806_vm6, %v1805_v12  ;;  %vm1853_vm13 = vcmp.eq.s32.totalorder %v3582_v58, %v1805_v12  ;;  %vm1854_vm14 = vcmp.eq.s32.totalorder %v4013_v49, %v1805_v12  ;;  %v2098_v10 = vshra.s32 %v3848_v38, 16  ;;  %vm2111_vm0 = vcmp.lt.s32.totalorder %v1883_v36, %v1884_v16 }
 0x4b3   : > { %v1885_v4 = vsel %vm1853_vm13, 2147483647, %v3582_v58  ;;  %v1886_v22 = vsel %vm1854_vm14, 2147483647, %v4013_v49  ;;  %v3862_v51 = vsel %vm2111_vm0, %v1883_v36, %v1884_v16  ;;  %v1891_v43 = vcvt.s32.f32 %v1889_v44 }
 0x4b4   : > { %v3858_v37 = vcvt.s32.f32 %v2098_v10  ;;  %vm2127_vm15 = vcmp.lt.s32.totalorder %v1885_v4, %v1886_v22  ;;  %v2114_v33 = vshra.s32 %v3862_v51, 16  ;;  %v2019_v54 = vcvt.s32.f32 %v2017_v55 }
 0x4b5   : > { %v3860_v61 = vsel %vm2127_vm15, %v1885_v4, %v1886_v22  ;;  %v2049_v12 = vand.u32 65535, %v3808_v9  ;;  %v2065_v36 = vand.u32 65535, %v3820_v57  ;;  %v2081_v9 = vand.u32 65535, %v3833_v52 }
 0x4b6   : > { %2101 = vmin.xlane.f32.xlu1 %v3858_v37  ;;  %v2130_v30 = vshra.s32 %v3860_v61, 16  ;;  %v3869_v58 = vcvt.s32.f32 %v2114_v33  ;;  %v2129_v52 = vand.u32 65535, %v3860_v61  ;;  %v2113_v44 = vand.u32 65535, %v3862_v51 }
 0x4b7   : > { %v2051_v10 = vcvt.s32.f32 %v2049_v12  ;;  %v2067_v4 = vcvt.s32.f32 %v2065_v36  ;;  %v2083_v16 = vcvt.s32.f32 %v2081_v9 }
 0x4b8   : > { %v3867_v26 = vcvt.s32.f32 %v2130_v30  ;;  %2117 = vmin.xlane.f32.xlu0 %v3869_v58  ;;  %v2115_v59 = vcvt.s32.f32 %v2113_v44 }
 0x4ba   : > { %2133 = vmin.xlane.f32.xlu1 %v3867_v26 }
 0x506   : > { %v3874_v42 = vpop.xlane.xlu0 %1893 }
 0x507   : > { %vm1895_vm6 = vcmp.eq.f32.partialorder %v3708_v8, %v3874_v42  ;;  %v1937_v8 = vand.u32 65535, %v3736_v13 }
 0x508   : > { %v1896_v24 = vsel %vm1895_vm6, %v1891_v43, inf  ;;  %vm2143_vm6 = vcmask 31768  }
 0x509   : > { %1897 = vmin.xlane.f32.xlu0 %v1896_v24  ;;  %v1939_v60 = vcvt.s32.f32 %v1937_v8 }
 0x50c   : > { %v3879_v50 = vpop.xlane.xlu1 %1909 }
 0x50d   : > { %vm1911_vm2 = vcmp.eq.f32.partialorder %v3720_v62, %v3879_v50 }
 0x50e   : > { %v1912_v46 = vsel %vm1911_vm2, %v1907_v11, inf }
 0x50f   : > { %1913 = vmin.xlane.f32.xlu1 %v1912_v46  ;;  %v1916_v46 = vcvt.f32.s32 %v3879_v50 }
 0x510   : > { %v3884_v20 = vpop.xlane.xlu0 %1925 }
 0x511   : > { %vm1927_vm3 = vcmp.eq.f32.partialorder %v3729_v35, %v3884_v20  ;;  %v1969_v35 = vand.u32 65535, %v3756_v56 }
 0x512   : > { %v1928_v48 = vsel %vm1927_vm3, %v1923_v1, inf }
 0x513   : > { %1929 = vmin.xlane.f32.xlu0 %v1928_v48  ;;  %v1971_v40 = vcvt.s32.f32 %v1969_v35  ;;  %v1932_v48 = vcvt.f32.s32 %v3884_v20 }
 0x514   : > { %v3890_v19 = vpop.xlane.xlu1 %1941 }
 0x515   : > { %vm1943_vm4 = vcmp.eq.f32.partialorder %v3741_v39, %v3890_v19 }
 0x516   : > { %v1944_v62 = vsel %vm1943_vm4, %v1939_v60, inf }
 0x517   : > { %1945 = vmin.xlane.f32.xlu1 %v1944_v62  ;;  %v1933_v62 = vshll.u32 %v1932_v48, 16 }
 0x518   : > { %v3894_v53 = vpop.xlane.xlu0 %1957 }
 0x519   : > { %vm1959_vm11 = vcmp.eq.f32.partialorder %v3749_v34, %v3894_v53  ;;  %v2001_v34 = vand.u32 65535, %v3777_v27  ;;  %v1964_v50 = vcvt.f32.s32 %v3894_v53 }
 0x51a   : > { %v1960_v13 = vsel %vm1959_vm11, %v1955_v18, inf  ;;  %v1948_v18 = vcvt.f32.s32 %v3890_v19 }
 0x51b   : > { %1961 = vmin.xlane.f32.xlu0 %v1960_v13  ;;  %v2003_v63 = vcvt.s32.f32 %v2001_v34 }
 0x51c   : > { %v3900_v47 = vpop.xlane.xlu1 %1973 }
 0x51d   : > { %vm1975_vm5 = vcmp.eq.f32.partialorder %v3761_v0, %v3900_v47 }
 0x51e   : > { %v1976_v39 = vsel %vm1975_vm5, %v1971_v40, inf  ;;  %v1949_v40 = vshll.u32 %v1948_v18, 16 }
 0x51f   : > { %1977 = vmin.xlane.f32.xlu1 %v1976_v39 }
 0x520   : > { %v3904_v15 = vpop.xlane.xlu0 %1989 }
 0x521   : > { %vm1991_vm7 = vcmp.eq.f32.partialorder %v3769_v17, %v3904_v15  ;;  %v2033_v17 = vand.u32 65535, %v3798_v45 }
 0x522   : > { %v1992_v56 = vsel %vm1991_vm7, %v1987_v2, inf }
 0x523   : > { %1993 = vmin.xlane.f32.xlu0 %v1992_v56  ;;  %v2035_v21 = vcvt.s32.f32 %v2033_v17  ;;  %v1965_v56 = vshll.u32 %v1964_v50, 16 }
 0x524   : > { %v3910_v6 = vpop.xlane.xlu1 %2005 }
 0x525   : > { %vm2007_vm8 = vcmp.eq.f32.partialorder %v3782_v3, %v3910_v6 }
 0x526   : > { %v2008_v0 = vsel %vm2007_vm8, %v2003_v63, inf  ;;  %v1980_v63 = vcvt.f32.s32 %v3900_v47 }
 0x527   : > { %2009 = vmin.xlane.f32.xlu1 %v2008_v0 }
 0x528   : > { %v3914_v7 = vpop.xlane.xlu0 %2021  ;;  %v1981_v17 = vshll.u32 %v1980_v63, 16 }
 0x529   : > { %vm2023_vm9 = vcmp.eq.f32.partialorder %v3792_v14, %v3914_v7 }
 0x52a   : > { %v2024_v27 = vsel %vm2023_vm9, %v2019_v54, inf  ;;  %v1996_v54 = vcvt.f32.s32 %v3904_v15  ;;  %v2028_v15 = vcvt.f32.s32 %v3914_v7 }
 0x52b   : > { %2025 = vmin.xlane.f32.xlu0 %v2024_v27 }
 0x52c   : > { %v3919_v25 = vpop.xlane.xlu1 %2037 }
 0x52d   : > { %vm2039_vm10 = vcmp.eq.f32.partialorder %v3806_v5, %v3919_v25 }
 0x52e   : > { %v2040_v3 = vsel %vm2039_vm10, %v2035_v21, inf }
 0x52f   : > { %2041 = vmin.xlane.f32.xlu1 %v2040_v3  ;;  %v1997_v3 = vshll.u32 %v1996_v54, 16 }
 0x530   : > { %v3924_v49 = vpop.xlane.xlu0 %2053 }
 0x531   : > { %vm2055_vm1 = vcmp.eq.f32.partialorder %v3817_v23, %v3924_v49  ;;  %v2097_v23 = vand.u32 65535, %v3848_v38 }
 0x532   : > { %v2056_v14 = vsel %vm2055_vm1, %v2051_v10, inf }
 0x533   : > { %2057 = vmin.xlane.f32.xlu0 %v2056_v14  ;;  %v2099_v33 = vcvt.s32.f32 %v2097_v23  ;;  %v2012_v14 = vcvt.f32.s32 %v3910_v6  ;;  %v2044_v6 = vcvt.f32.s32 %v3919_v25 }
 0x535   : > { %v3929_v45 = vpop.xlane.xlu1 %2069 }
 0x536   : > { %vm2071_vm12 = vcmp.eq.f32.partialorder %v3830_v41, %v3929_v45 }
 0x537   : > { %v2072_v5 = vsel %vm2071_vm12, %v2067_v4, inf }
 0x538   : > { %2073 = vmin.xlane.f32.xlu1 %v2072_v5  ;;  %v3934_v22 = vpop.xlane.xlu0 %2085  ;;  %v2013_v5 = vshll.u32 %v2012_v14, 16 }
 0x539   : > { %vm2087_vm13 = vcmp.eq.f32.partialorder %v3837_v32, %v3934_v22  ;;  %v2131_v32 = vcvt.s32.f32 %v2129_v52 }
 0x53a   : > { %v2088_v57 = vsel %vm2087_vm13, %v2083_v16, inf }
 0x53b   : > { %2089 = vmin.xlane.f32.xlu0 %v2088_v57 }
 0x53f   : > { %v3939_v30 = vpop.xlane.xlu1 %2101 }
 0x540   : > { %vm2103_vm14 = vcmp.eq.f32.partialorder %v3858_v37, %v3939_v30  ;;  %v1900_v37 = vcvt.f32.s32 %v3874_v42 }
 0x541   : > { %v2104_v41 = vsel %vm2103_vm14, %v2099_v33, inf  ;;  %v3947_v24 = vpop.xlane.xlu0 %2117  ;;  %v2029_v33 = vshll.u32 %v2028_v15, 16 }
 0x542   : > { %2105 = vmin.xlane.f32.xlu1 %v2104_v41  ;;  %vm2119_vm0 = vcmp.eq.f32.partialorder %v3869_v58, %v3947_v24  ;;  %v1901_v11 = vshll.u32 %v1900_v37, 16 }
 0x543   : > { %v3945_v43 = vpop.xlane.xlu1 %2133  ;;  %v2120_v61 = vsel %vm2119_vm0, %v2115_v59, inf  ;;  %v2045_v59 = vshll.u32 %v2044_v6, 16 }
 0x544   : > { %vm2135_vm15 = vcmp.eq.f32.partialorder %v3867_v26, %v3945_v43  ;;  %2121 = vmin.xlane.f32.xlu0 %v2120_v61  ;;  %v1917_v26 = vshll.u32 %v1916_v46, 16  ;;  %v2076_v46 = vcvt.f32.s32 %v3929_v45 }
 0x545   : > { %v2136_v38 = vsel %vm2135_vm15, %v2131_v32, inf }
 0x546   : > { %2137 = vmin.xlane.f32.xlu1 %v2136_v38  ;;  %v2060_v38 = vcvt.f32.s32 %v3924_v49  ;;  %v2077_v48 = vshll.u32 %v2076_v46, 16 }
 0x592   : > { %v1898_v51 = vpop.xlane.xlu0 %1897 }
 0x593   : > { %v1899_v28 = vcvt.f32.s32 %v1898_v51 }
 0x595   : > { %v1902_v1 = vadd.s32 %v1901_v11, %v1899_v28  ;;  %v2061_v28 = vshll.u32 %v2060_v38, 16 }
 0x597   : > { %2144 = vst.msk [vmem:[#allocation2] sm:$0xff] %vm2143_vm6, %v1902_v1 }
 0x598   : > { %v1914_v8 = vpop.xlane.xlu1 %1913 }
 0x599   : > { %v1915_v58 = vcvt.f32.s32 %v1914_v8 }
 0x59b   : > { %v1918_v29 = vadd.s32 %v1917_v26, %v1915_v58  ;;  %v2092_v58 = vcvt.f32.s32 %v3934_v22 }
 0x59c   : > { %v1930_v60 = vpop.xlane.xlu0 %1929 }
 0x59d   : > { %2145 = vst.msk [vmem:[#allocation2 + $0x8] sm:$0xff] %vm2143_vm6, %v1918_v29  ;;  %v1931_v42 = vcvt.f32.s32 %v1930_v60 }
 0x59e   : > { %v2163_v35 = vld [vmem:[#allocation2] sm:$0xff] }
 0x59f   : > { %v1934_v13 = vadd.s32 %v1933_v62, %v1931_v42  ;;  %2179 = vxpose.xlu0.b32.start [1/16] (narrow) %v2163_v35, 8  ;;  %v2093_v42 = vshll.u32 %v2092_v58, 16  ;;  %v2108_v35 = vcvt.f32.s32 %v3939_v30 }
 0x5a0   : > { %v1946_v31 = vpop.xlane.xlu1 %1945 }
 0x5a1   : > { %2146 = vst.msk [vmem:[#allocation2 + $0x10] sm:$0xff] %vm2143_vm6, %v1934_v13  ;;  %v1947_v39 = vcvt.f32.s32 %v1946_v31  ;;  %v2109_v50 = vshll.u32 %v2108_v35, 16  ;;  %v2140_v31 = vcvt.f32.s32 %v3945_v43 }
 0x5a3   : > { %v1950_v20 = vadd.s32 %v1949_v40, %v1947_v39  ;;  %v2124_v40 = vcvt.f32.s32 %v3947_v24 }
 0x5a4   : > { %v1962_v2 = vpop.xlane.xlu0 %1961  ;;  %v2164_v34 = vld [vmem:[#allocation2 + $0x8] sm:$0xff] }
 0x5a5   : > { %v1963_v55 = vcvt.f32.s32 %v1962_v2  ;;  %2180 = vxpose.xlu0.b32.cont [2/16] (narrow) %v2164_v34, 8  ;;  %2147 = vst.msk [vmem:[#allocation2 + $0x18] sm:$0xff] %vm2143_vm6, %v1950_v20  ;;  %v2125_v63 = vshll.u32 %v2124_v40, 16 }
 0x5a7   : > { %v1966_v19 = vadd.s32 %v1965_v56, %v1963_v55  ;;  %v2141_v55 = vshll.u32 %v2140_v31, 16 }
 0x5a8   : > { %v2165_v0 = vld [vmem:[#allocation2 + $0x10] sm:$0xff]  ;;  %v1978_v53 = vpop.xlane.xlu1 %1977 }
 0x5a9   : > { %2148 = vst.msk [vmem:[#allocation2 + $0x20] sm:$0xff] %vm2143_vm6, %v1966_v19  ;;  %2181 = vxpose.xlu0.b32.cont [3/16] (narrow) %v2165_v0, 8  ;;  %v1979_v27 = vcvt.f32.s32 %v1978_v53 }
 0x5ab   : > { %v1982_v21 = vadd.s32 %v1981_v17, %v1979_v27 }
 0x5ac   : > { %v1994_v12 = vpop.xlane.xlu0 %1993  ;;  %v2166_v36 = vld [vmem:[#allocation2 + $0x18] sm:$0xff] }
 0x5ad   : > { %v1995_v10 = vcvt.f32.s32 %v1994_v12  ;;  %2149 = vst.msk [vmem:[#allocation2 + $0x28] sm:$0xff] %vm2143_vm6, %v1982_v21  ;;  %2182 = vxpose.xlu0.b32.cont [4/16] (narrow) %v2166_v36, 8 }
 0x5af   : > { %v1998_v47 = vadd.s32 %v1997_v3, %v1995_v10 }
 0x5b0   : > { %v2167_v4 = vld [vmem:[#allocation2 + $0x20] sm:$0xff]  ;;  %v2010_v9 = vpop.xlane.xlu1 %2009 }
 0x5b1   : > { %2150 = vst.msk [vmem:[#allocation2 + $0x30] sm:$0xff] %vm2143_vm6, %v1998_v47  ;;  %v2011_v16 = vcvt.f32.s32 %v2010_v9  ;;  %2183 = vxpose.xlu0.b32.cont [5/16] (narrow) %v2167_v4, 8 }
 0x5b3   : > { %v2014_v57 = vadd.s32 %v2013_v5, %v2011_v16 }
 0x5b4   : > { %v2026_v23 = vpop.xlane.xlu0 %2025  ;;  %v2168_v44 = vld [vmem:[#allocation2 + $0x28] sm:$0xff] }
 0x5b5   : > { %v2027_v52 = vcvt.f32.s32 %v2026_v23  ;;  %2151 = vst.msk [vmem:[#allocation2 + $0x38] sm:$0xff] %vm2143_vm6, %v2014_v57  ;;  %2184 = vxpose.xlu0.b32.cont [6/16] (narrow) %v2168_v44, 8 }
 0x5b7   : > { %v2030_v41 = vadd.s32 %v2029_v33, %v2027_v52 }
 0x5b8   : > { %v2169_v32 = vld [vmem:[#allocation2 + $0x30] sm:$0xff]  ;;  %v2042_v7 = vpop.xlane.xlu1 %2041 }
 0x5b9   : > { %2152 = vst.msk [vmem:[#allocation2 + $0x40] sm:$0xff] %vm2143_vm6, %v2030_v41  ;;  %v2043_v61 = vcvt.f32.s32 %v2042_v7  ;;  %2185 = vxpose.xlu0.b32.cont [7/16] (narrow) %v2169_v32, 8 }
 0x5bb   : > { %v2046_v37 = vadd.s32 %v2045_v59, %v2043_v61 }
 0x5bc   : > { %v2058_v51 = vpop.xlane.xlu0 %2057  ;;  %v2170_v11 = vld [vmem:[#allocation2 + $0x38] sm:$0xff] }
 0x5bd   : > { %2153 = vst.msk [vmem:[#allocation2 + $0x48] sm:$0xff] %vm2143_vm6, %v2046_v37  ;;  %v2059_v25 = vcvt.f32.s32 %v2058_v51  ;;  %2186 = vxpose.xlu0.b32.cont [8/16] (narrow) %v2170_v11, 8 }
 0x5bf   : > { %v2062_v1 = vadd.s32 %v2061_v28, %v2059_v25 }
 0x5c0   : > { %v2171_v8 = vld [vmem:[#allocation2 + $0x40] sm:$0xff] }
 0x5c1   : > { %v2074_v26 = vpop.xlane.xlu1 %2073  ;;  %2154 = vst.msk [vmem:[#allocation2 + $0x50] sm:$0xff] %vm2143_vm6, %v2062_v1  ;;  %2187 = vxpose.xlu0.b32.cont [9/16] (narrow) %v2171_v8, 8 }
 0x5c2   : > { %v2075_v49 = vcvt.f32.s32 %v2074_v26 }
 0x5c4   : > { %v2078_v29 = vadd.s32 %v2077_v48, %v2075_v49  ;;  %v2090_v60 = vpop.xlane.xlu0 %2089  ;;  %v2172_v62 = vld [vmem:[#allocation2 + $0x48] sm:$0xff] }
 0x5c5   : > { %v2091_v45 = vcvt.f32.s32 %v2090_v60  ;;  %2188 = vxpose.xlu0.b32.cont [10/16] (narrow) %v2172_v62, 8 }
 0x5c6   : > { %2155 = vst.msk [vmem:[#allocation2 + $0x58] sm:$0xff] %vm2143_vm6, %v2078_v29 }
 0x5c7   : > { %v2094_v18 = vadd.s32 %v2093_v42, %v2091_v45 }
 0x5c8   : > { %v2173_v13 = vld [vmem:[#allocation2 + $0x50] sm:$0xff] }
 0x5c9   : > { %2156 = vst.msk [vmem:[#allocation2 + $0x60] sm:$0xff] %vm2143_vm6, %v2094_v18  ;;  %2189 = vxpose.xlu0.b32.cont [11/16] (narrow) %v2173_v13, 8 }
 0x5cb   : > { %v2106_v22 = vpop.xlane.xlu1 %2105 }
 0x5cc   : > { %v2107_v39 = vcvt.f32.s32 %v2106_v22 }
 0x5cd   : > { %v2174_v20 = vld [vmem:[#allocation2 + $0x58] sm:$0xff]  ;;  %v2122_v56 = vpop.xlane.xlu0 %2121 }
 0x5ce   : > { %2190 = vxpose.xlu0.b32.cont [12/16] (narrow) %v2174_v20, 8  ;;  %v2110_v2 = vadd.s32 %v2109_v50, %v2107_v39  ;;  %v2123_v19 = vcvt.f32.s32 %v2122_v56 }
 0x5cf   : > { %v2138_v34 = vpop.xlane.xlu1 %2137 }
 0x5d0   : > { %2157 = vst.msk [vmem:[#allocation2 + $0x68] sm:$0xff] %vm2143_vm6, %v2110_v2  ;;  %v2139_v30 = vcvt.f32.s32 %v2138_v34  ;;  %v2175_v0 = vld [vmem:[#allocation2 + $0x60] sm:$0xff]  ;;  %v2126_v53 = vadd.s32 %v2125_v63, %v2123_v19 }
 0x5d2   : > { %2191 = vxpose.xlu0.b32.cont [13/16] (narrow) %v2175_v0, 8  ;;  %v2142_v54 = vadd.s32 %v2141_v55, %v2139_v30  ;;  %2158 = vst.msk [vmem:[#allocation2 + $0x70] sm:$0xff] %vm2143_vm6, %v2126_v53 }
 0x5d4   : > { %2159 = vst.msk [vmem:[#allocation2 + $0x78] sm:$0xff] %vm2143_vm6, %v2142_v54 }
 0x5d7   : > { %v2176_v43 = vld [vmem:[#allocation2 + $0x68] sm:$0xff] }
 0x5d8   : > { %2192 = vxpose.xlu0.b32.cont [14/16] (narrow) %v2176_v43, 8 }
 0x5d9   : > { %v2177_v24 = vld [vmem:[#allocation2 + $0x70] sm:$0xff] }
 0x5db   : > { %v2178_v17 = vld [vmem:[#allocation2 + $0x78] sm:$0xff] }
 0x5dc   : > { %2193 = vxpose.xlu0.b32.cont [15/16] (narrow) %v2177_v24, 8 }
 0x5e0   : > { %2194 = vxpose.xlu0.b32.end [16/16] (narrow) %v2178_v17, 8 }
 0x620   : > { %v2195_v27 = vpop.trf.xlu0 }
 0x621   : > { %v2211_v21 = vand.u32 127, %v2195_v27 }
 0x623   : > { %2212 = vst [vmem:[%s264_s5] sm:$0xf] %v2211_v21 }
 0x624 PF: > { %s13_s14 = sadd.s32 1, %s2512_s14   ;;  %s4014_s12 = smov %s2508_s13 }
 0x625   : > { %p10_p5 = scmp.ge.s32.totalorder %s13_s14, 4   ;;  %s4015_s13 = smov %s4017_s15 }
 0x627   :  { %12 = sbr.rel (!%p10_p5) target bundleno = 2 (0x2), region = 76 }

</bundles_post_ra>
